<compile_context>
chip_gen: v7x
topology: tpu7x:2x2x1
jax: 0.10.0
libtpu: 0.0.40
codegen_flags: <defaults>
</compile_context>

<pallas_src>
import functools

import jax
import jax.numpy as jnp
from jax import lax
from jax.experimental import pallas as pl
from jax.experimental.pallas import tpu as pltpu


# ---------------------------------------------------------------------------
# Pallas kernel: whole MaxPoolDownSize forward for one image per grid step
# ---------------------------------------------------------------------------
def _elu(v):
    # ELU(alpha=1): x if x > 0 else exp(x) - 1
    return jnp.where(v > 0, v, jnp.exp(jnp.minimum(v, 0.0)) - 1.0)


def _fused_kernel(x_ref, wred_ref, bred_ref, w3_ref, b3_ref, *rest,
                  depth, H0, W0, mid, cout, margin):
    """Channel-on-sublane / spatial-on-lane layout.

       x_ref:    (1, Cin, H0*W0)          NCHW-flat image
       wred_ref: (mid, Cin)               BN-folded 1x1 reduce weights
       bred_ref: (mid, 1)
       w3_ref:   (depth, cout, 9*mid)     BN-folded 3x3 weights, [tap, cin]-major cols
       b3_ref:   (depth, cout, 1)
       o_refs:   depth x (1, cout, H0*W0)
       feat_ref: (mid, H0*W0 + 2*margin)  VMEM scratch, zero margins = vertical pad
       stack_ref:(9*mid, H0*W0)           staging slab for the fused per-level matmul
    """
    o_refs = rest[:depth]
    feat_ref = rest[depth]
    stack_ref = rest[depth + 1]
    HW = H0 * W0
    M = margin

    # Zero ONLY the margins (never written elsewhere); the central HW region is
    # fully overwritten by the reduce conv below.  Done every step so it stays
    # correct under megacore grid sharding (scratch is per-core).
    feat_ref[:, :M] = jnp.zeros((mid, M), jnp.float32)
    feat_ref[:, M + HW:] = jnp.zeros((mid, M), jnp.float32)

    # Column index of every flat pixel (for horizontal boundary masks).
    col = lax.broadcasted_iota(jnp.int32, (1, HW), 1) % W0

    # ---- reduce ConvBlock: 1x1 conv as one (mid,Cin) @ (Cin,HW) matmul ----
    f = jnp.dot(wred_ref[...], x_ref[0], preferred_element_type=jnp.float32)
    feat_ref[:, M:M + HW] = _elu(f + bred_ref[...])

    for lvl in range(depth):
        d = 1 << lvl                      # dilation of level lvl on the full grid

        if lvl > 0:
            # 2x2 max-pool "in place": level values live at cols (d*h*W0 + d*w).
            dp = d >> 1
            p00 = feat_ref[:, M:M + HW]
            p01 = feat_ref[:, M + dp:M + dp + HW]
            p10 = feat_ref[:, M + dp * W0:M + dp * W0 + HW]
            p11 = feat_ref[:, M + dp * W0 + dp:M + dp * W0 + dp + HW]
            feat_ref[:, M:M + HW] = jnp.maximum(jnp.maximum(p00, p01),
                                                jnp.maximum(p10, p11))

        # Hoisted horizontal masks (vertical handled by the zero margins).
        mask_l = jnp.broadcast_to(col >= d, (mid, HW))
        mask_r = jnp.broadcast_to(col < (W0 - d), (mid, HW))

        # ---- stage the 9 shifted/masked slabs, then ONE fused K=9*mid matmul ----
        for ty in (-1, 0, 1):
            for tx in (-1, 0, 1):
                tap = (ty + 1) * 3 + (tx + 1)
                shift = d * (ty * W0 + tx)
                slab = feat_ref[:, M + shift:M + shift + HW]       # (mid, HW)
                if tx == -1:
                    slab = jnp.where(mask_l, slab, 0.0)
                elif tx == 1:
                    slab = jnp.where(mask_r, slab, 0.0)
                stack_ref[tap * mid:(tap + 1) * mid, :] = slab

        acc = jnp.dot(w3_ref[lvl], stack_ref[...],                  # (cout, HW)
                      preferred_element_type=jnp.float32)
        y = _elu(acc + b3_ref[lvl])                                 # bias once/level
        o_refs[lvl][0] = y.astype(o_refs[lvl].dtype)


# ---------------------------------------------------------------------------
# Wrapper
# ---------------------------------------------------------------------------
def max_pool_down_size(x_nchw, wred, bred, w3, b3, *, depth, mid, cout):
    N, cin, H0, W0 = x_nchw.shape
    d_max = 1 << (depth - 1)
    assert H0 % d_max == 0 and W0 % d_max == 0, \
        "spatial dims must be divisible by 2**(depth-1)"
    HW = H0 * W0
    # margin >= largest |tap shift| = d_max*(W0+1); round to lane multiple so the
    # central region starts lane-aligned.
    margin = ((d_max * (W0 + 1) + 127) // 128) * 128

    # NCHW is already channel-major: just flatten the spatial dims (no transpose).
    x_flat = x_nchw.reshape(N, cin, HW)

    kernel = functools.partial(_fused_kernel, depth=depth, H0=H0, W0=W0,
                               mid=mid, cout=cout, margin=margin)

    out_shapes = tuple(jax.ShapeDtypeStruct((N, cout, HW), x_nchw.dtype)
                       for _ in range(depth))
    out_specs = tuple(pl.BlockSpec((1, cout, HW), lambda n: (n, 0, 0))
                      for _ in range(depth))

    # Explicit VMEM budget (f32): pipelined blocks (x2 buffers) + weights + scratch.
    block_elems = 2 * (cin * HW + depth * cout * HW)
    weight_elems = mid * cin + mid + depth * cout * 9 * mid + depth * cout
    scratch_elems = mid * (HW + 2 * margin) + 9 * mid * HW
    vmem_bytes = 4 * (2 * (block_elems + weight_elems) + scratch_elems) + (4 << 20)
    vmem_bytes = int(min(max(vmem_bytes, 16 << 20), 64 << 20))

    outs = pl.pallas_call(
        kernel,
        out_shape=out_shapes,
        grid=(N,),
        in_specs=[
            pl.BlockSpec((1, cin, HW), lambda n: (n, 0, 0)),
            pl.BlockSpec((mid, cin), lambda n: (0, 0)),
            pl.BlockSpec((mid, 1), lambda n: (0, 0)),
            pl.BlockSpec((depth, cout, 9 * mid), lambda n: (0, 0, 0)),
            pl.BlockSpec((depth, cout, 1), lambda n: (0, 0, 0)),
        ],
        out_specs=out_specs,
        scratch_shapes=[
            pltpu.VMEM((mid, HW + 2 * margin), jnp.float32),
            pltpu.VMEM((9 * mid, HW), jnp.float32),
        ],
        compiler_params=pltpu.CompilerParams(
            dimension_semantics=("parallel",),
            vmem_limit_bytes=vmem_bytes),
    )(x_flat, wred, bred, w3, b3)

    # Compact the dilated (full-resolution) outputs; already NCHW-flat.
    results = []
    for i, of in enumerate(outs):
        d = 1 << i
        results.append(of.reshape(N, cout, H0, W0)[:, :, ::d, ::d])
    return results


# ---------------------------------------------------------------------------
# Parameter init (deterministic, PyTorch-like shapes) + BN folding
# ---------------------------------------------------------------------------
def init_conv_block_params(key, cin, cout, ksize):
    kw, kb, kg, kbeta, km, kv = jax.random.split(key, 6)
    fan_in = cin * ksize * ksize
    bound = 1.0 / (fan_in ** 0.5)
    w = jax.random.uniform(kw, (cout, cin, ksize, ksize), jnp.float32, -bound, bound)
    b = jax.random.uniform(kb, (cout,), jnp.float32, -bound, bound)
    gamma = jax.random.uniform(kg, (cout,), jnp.float32, 0.5, 1.5)
    beta = 0.1 * jax.random.normal(kbeta, (cout,), jnp.float32)
    running_mean = 0.1 * jax.random.normal(km, (cout,), jnp.float32)
    running_var = jax.random.uniform(kv, (cout,), jnp.float32, 0.5, 1.5)
    eps = 1e-5

    # Fold BatchNorm (inference mode) into conv weight & bias.
    scale = gamma / jnp.sqrt(running_var + eps)
    w_f = w * scale[:, None, None, None]               # (O, I, KH, KW)
    b_f = (b - running_mean) * scale + beta            # (O,)
    return w_f, b_f


class MaxPoolDownSizePallas:
    def __init__(self, key, in_channels, mid_channels, out_channels, depth):
        self.depth = depth
        self.mid = mid_channels
        self.cout = out_channels
        keys = jax.random.split(key, depth + 1)

        wred_f, bred_f = init_conv_block_params(keys[0], in_channels, mid_channels, 1)
        self.reduce_ref = (wred_f, bred_f)
        # kernel layout: (mid, Cin) / (mid, 1)
        self.wred = wred_f.reshape(mid_channels, in_channels)
        self.bred = bred_f.reshape(mid_channels, 1)

        self.convs_ref = []
        w3_parts, b3_parts = [], []
        for i in range(depth):
            w_f, b_f = init_conv_block_params(keys[i + 1], mid_channels, out_channels, 3)
            self.convs_ref.append((w_f, b_f))
            # per-level (cout, 9*mid) with column index = (kh*3 + kw)*mid + cin_idx
            w3_parts.append(jnp.transpose(w_f, (0, 2, 3, 1))
                            .reshape(out_channels, 9 * mid_channels))
            b3_parts.append(b_f.reshape(out_channels, 1))
        self.w3 = jnp.stack(w3_parts, axis=0)           # (depth, cout, 9*mid)
        self.b3 = jnp.stack(b3_parts, axis=0)            # (depth, cout, 1)

    def __call__(self, x_nchw):
        return max_pool_down_size(x_nchw, self.wred, self.bred, self.w3, self.b3,
                                  depth=self.depth, mid=self.mid, cout=self.cout)


# ---------------------------------------------------------------------------
# Pure-JAX reference (NCHW, mirrors the PyTorch forward, default precision)
# ---------------------------------------------------------------------------
def reference_forward(module, x_nchw):
    def conv(x, w, b, pad):
        y = lax.conv_general_dilated(
            x, w, (1, 1), [(pad, pad), (pad, pad)],
            dimension_numbers=("NCHW", "OIHW", "NCHW"))
        y = y + b[None, :, None, None]
        return jnp.where(y > 0, y, jnp.exp(jnp.minimum(y, 0.0)) - 1.0)

    def pool(x):
        return lax.reduce_window(x, -jnp.inf, lax.max,
                                 (1, 1, 2, 2), (1, 1, 2, 2), "VALID")

    w, b = module.reduce_ref
    out = conv(x_nchw, w, b, 0)
    outs = []
    for i, (w, b) in enumerate(module.convs_ref):
        out = out if i == 0 else pool(out)
        outs.append(conv(out, w, b, 1))
    return outs


if __name__ == "__main__":
    key = jax.random.PRNGKey(0)
    kparam, kx = jax.random.split(key)

    N, Cin, H, W = 2, 4, 16, 16
    mid_channels, out_channels, depth = 8, 8, 3

    x = jax.random.normal(kx, (N, Cin, H, W), jnp.float32)
    module = MaxPoolDownSizePallas(kparam, Cin, mid_channels, out_channels, depth)

    fwd = jax.jit(lambda xx: module(xx))
    outs = jax.block_until_ready(fwd(x))

    refs = reference_forward(module, x)
    assert len(outs) == depth
    # Default MXU precision in both kernel and reference, so compare with a
    # slightly loose tolerance.
    for o, r in zip(outs, refs):
        assert o.shape == r.shape, (o.shape, r.shape)
        assert o.dtype == r.dtype, (o.dtype, r.dtype)
        max_err = float(jnp.max(jnp.abs(o - r)))
        assert jnp.allclose(o, r, atol=2e-2, rtol=2e-2), max_err

    print("KERNEL_OK")
</pallas_src>

<mosaic_0001>
module attributes {stable_mosaic.version = 11 : i64} {
  func.func @_fused_kernel(%arg0: i32, %arg1: memref<1x4x256xf32, #tpu.memory_space<vmem>>, %arg2: memref<8x4xf32, #tpu.memory_space<vmem>>, %arg3: memref<8x1xf32, #tpu.memory_space<vmem>>, %arg4: memref<3x8x72xf32, #tpu.memory_space<vmem>>, %arg5: memref<3x8x1xf32, #tpu.memory_space<vmem>>, %arg6: memref<1x8x256xf32, #tpu.memory_space<vmem>>, %arg7: memref<1x8x256xf32, #tpu.memory_space<vmem>>, %arg8: memref<1x8x256xf32, #tpu.memory_space<vmem>>, %arg9: memref<8x512xf32, #tpu.memory_space<vmem>>, %arg10: memref<72x256xf32, #tpu.memory_space<vmem>>) attributes {dimension_semantics = [#tpu.dimension_semantics<parallel>], iteration_bounds = array<i64: 2>, scalar_prefetch = 0 : i64, scratch_operands = 2 : i64, tpu.core_type = #tpu.core_type<tc>, window_params = [{transform_indices = @transform_0, window_bounds = array<i64: 1, 4, 256>}, {pipeline_mode = #tpu.pipeline_mode<synchronous>, transform_indices = @transform_1, window_bounds = array<i64: 8, 4>}, {pipeline_mode = #tpu.pipeline_mode<synchronous>, transform_indices = @transform_2, window_bounds = array<i64: 8, 1>}, {pipeline_mode = #tpu.pipeline_mode<synchronous>, transform_indices = @transform_3, window_bounds = array<i64: 3, 8, 72>}, {pipeline_mode = #tpu.pipeline_mode<synchronous>, transform_indices = @transform_4, window_bounds = array<i64: 3, 8, 1>}, {transform_indices = @transform_5, window_bounds = array<i64: 1, 8, 256>}, {transform_indices = @transform_6, window_bounds = array<i64: 1, 8, 256>}, {transform_indices = @transform_7, window_bounds = array<i64: 1, 8, 256>}]} {
    %cst = arith.constant 0.000000e+00 : f32
    %0 = vector.broadcast %cst : f32 to vector<8x128xf32>
    %c0 = arith.constant 0 : index
    %c0_0 = arith.constant 0 : index
    %1 = vector.load %arg9[%c0, %c0_0] : memref<8x512xf32, #tpu.memory_space<vmem>>, vector<8x128xf32>
    tpu.vector_store %arg9[%c0, %c0_0], %0 {strides = array<i32>} : memref<8x512xf32, #tpu.memory_space<vmem>>, vector<8x128xf32>,
    %cst_1 = arith.constant 0.000000e+00 : f32
    %2 = vector.broadcast %cst_1 : f32 to vector<8x128xf32>
    %c0_2 = arith.constant 0 : index
    %c384 = arith.constant 384 : index
    %3 = vector.load %arg9[%c0_2, %c384] : memref<8x512xf32, #tpu.memory_space<vmem>>, vector<8x128xf32>
    tpu.vector_store %arg9[%c0_2, %c384], %2 {strides = array<i32>} : memref<8x512xf32, #tpu.memory_space<vmem>>, vector<8x128xf32>,
    %4 = tpu.iota {dimensions = array<i32: 1>} : vector<1x256xi32>
    %c16_i32 = arith.constant 16 : i32
    %c0_i32 = arith.constant 0 : i32
    %5 = arith.cmpi eq, %c16_i32, %c0_i32 : i32
    %c1_i32 = arith.constant 1 : i32
    %6 = arith.select %5, %c1_i32, %c16_i32 : i32
    %7 = vector.broadcast %6 : i32 to vector<1x256xi32>
    %8 = arith.remsi %4, %7 : vector<1x256xi32>
    %c0_i32_3 = arith.constant 0 : i32
    %9 = vector.broadcast %c0_i32_3 : i32 to vector<1x256xi32>
    %10 = arith.cmpi ne, %8, %9 : vector<1x256xi32>
    %c0_i32_4 = arith.constant 0 : i32
    %11 = vector.broadcast %c0_i32_4 : i32 to vector<1x256xi32>
    %12 = arith.cmpi slt, %8, %11 : vector<1x256xi32>
    %c0_i32_5 = arith.constant 0 : i32
    %13 = arith.cmpi slt, %6, %c0_i32_5 : i32
    %14 = vector.broadcast %13 : i1 to vector<1x256xi1>
    %15 = vector.broadcast %14 : vector<1x256xi1> to vector<1x256xi1>
    %16 = arith.xori %12, %15 : vector<1x256xi1>
    %17 = arith.andi %16, %10 : vector<1x256xi1>
    %18 = vector.broadcast %6 : i32 to vector<1x256xi32>
    %19 = arith.addi %8, %18 : vector<1x256xi32>
    %20 = arith.select %17, %19, %8 : vector<1x256xi1>, vector<1x256xi32>
    %c0_6 = arith.constant 0 : index
    %c0_7 = arith.constant 0 : index
    %21 = vector.load %arg2[%c0_6, %c0_7] : memref<8x4xf32, #tpu.memory_space<vmem>>, vector<8x4xf32>
    %c0_8 = arith.constant 0 : index
    %c0_9 = arith.constant 0 : index
    %c0_10 = arith.constant 0 : index
    %22 = vector.load %arg1[%c0_8, %c0_9, %c0_10] : memref<1x4x256xf32, #tpu.memory_space<vmem>>, vector<1x4x256xf32>
    %23 = vector.shape_cast %22 : vector<1x4x256xf32> to vector<4x256xf32>
    %cst_11 = arith.constant dense<0.000000e+00> : vector<8x256xf32>
    %24 = tpu.matmul %21, %23, %cst_11 {dimension_numbers = #tpu.dot_dimension_numbers<[1], [0], [0], [1], [0, 0, 1, 1], [], []>} : vector<8x4xf32>, vector<4x256xf32>, vector<8x256xf32> -> vector<8x256xf32>
    %c0_12 = arith.constant 0 : index
    %c0_13 = arith.constant 0 : index
    %25 = vector.load %arg3[%c0_12, %c0_13] : memref<8x1xf32, #tpu.memory_space<vmem>>, vector<8x1xf32>
    %26 = vector.broadcast %25 : vector<8x1xf32> to vector<8x256xf32>
    %27 = arith.addf %24, %26 : vector<8x256xf32>
    %cst_14 = arith.constant 0.000000e+00 : f32
    %28 = vector.broadcast %cst_14 : f32 to vector<8x256xf32>
    %29 = arith.cmpf ogt, %27, %28 : vector<8x256xf32>
    %cst_15 = arith.constant 0.000000e+00 : f32
    %30 = vector.broadcast %cst_15 : f32 to vector<8x256xf32>
    %31 = arith.minimumf %27, %30 : vector<8x256xf32>
    %32 = math.exp %31 : vector<8x256xf32>
    %cst_16 = arith.constant 1.000000e+00 : f32
    %33 = vector.broadcast %cst_16 : f32 to vector<8x256xf32>
    %34 = arith.subf %32, %33 : vector<8x256xf32>
    %35 = arith.select %29, %27, %34 : vector<8x256xi1>, vector<8x256xf32>
    %c0_17 = arith.constant 0 : index
    %c128 = arith.constant 128 : index
    %36 = vector.load %arg9[%c0_17, %c128] : memref<8x512xf32, #tpu.memory_space<vmem>>, vector<8x256xf32>
    tpu.vector_store %arg9[%c0_17, %c128], %35 {strides = array<i32>} : memref<8x512xf32, #tpu.memory_space<vmem>>, vector<8x256xf32>,
    %c1_i32_18 = arith.constant 1 : i32
    %37 = vector.broadcast %c1_i32_18 : i32 to vector<1x256xi32>
    %38 = arith.cmpi sge, %20, %37 : vector<1x256xi32>
    %39 = vector.shape_cast %38 : vector<1x256xi1> to vector<1x256xi1>
    %40 = vector.broadcast %39 : vector<1x256xi1> to vector<8x256xi1>
    %c15_i32 = arith.constant 15 : i32
    %41 = vector.broadcast %c15_i32 : i32 to vector<1x256xi32>
    %42 = arith.cmpi slt, %20, %41 : vector<1x256xi32>
    %43 = vector.shape_cast %42 : vector<1x256xi1> to vector<1x256xi1>
    %44 = vector.broadcast %43 : vector<1x256xi1> to vector<8x256xi1>
    %c0_19 = arith.constant 0 : index
    %c111 = arith.constant 111 : index
    %45 = vector.load %arg9[%c0_19, %c111] : memref<8x512xf32, #tpu.memory_space<vmem>>, vector<8x256xf32>
    %cst_20 = arith.constant 0.000000e+00 : f32
    %46 = vector.broadcast %cst_20 : f32 to vector<8x256xf32>
    %47 = arith.select %40, %45, %46 : vector<8x256xi1>, vector<8x256xf32>
    %c0_21 = arith.constant 0 : index
    %c0_22 = arith.constant 0 : index
    %48 = vector.load %arg10[%c0_21, %c0_22] : memref<72x256xf32, #tpu.memory_space<vmem>>, vector<8x256xf32>
    tpu.vector_store %arg10[%c0_21, %c0_22], %47 {strides = array<i32>} : memref<72x256xf32, #tpu.memory_space<vmem>>, vector<8x256xf32>,
    %c0_23 = arith.constant 0 : index
    %c112 = arith.constant 112 : index
    %49 = vector.load %arg9[%c0_23, %c112] : memref<8x512xf32, #tpu.memory_space<vmem>>, vector<8x256xf32>
    %c8 = arith.constant 8 : index
    %c0_24 = arith.constant 0 : index
    %50 = vector.load %arg10[%c8, %c0_24] : memref<72x256xf32, #tpu.memory_space<vmem>>, vector<8x256xf32>
    tpu.vector_store %arg10[%c8, %c0_24], %49 {strides = array<i32>} : memref<72x256xf32, #tpu.memory_space<vmem>>, vector<8x256xf32>,
    %c0_25 = arith.constant 0 : index
    %c113 = arith.constant 113 : index
    %51 = vector.load %arg9[%c0_25, %c113] : memref<8x512xf32, #tpu.memory_space<vmem>>, vector<8x256xf32>
    %cst_26 = arith.constant 0.000000e+00 : f32
    %52 = vector.broadcast %cst_26 : f32 to vector<8x256xf32>
    %53 = arith.select %44, %51, %52 : vector<8x256xi1>, vector<8x256xf32>
    %c16 = arith.constant 16 : index
    %c0_27 = arith.constant 0 : index
    %54 = vector.load %arg10[%c16, %c0_27] : memref<72x256xf32, #tpu.memory_space<vmem>>, vector<8x256xf32>
    tpu.vector_store %arg10[%c16, %c0_27], %53 {strides = array<i32>} : memref<72x256xf32, #tpu.memory_space<vmem>>, vector<8x256xf32>,
    %c0_28 = arith.constant 0 : index
    %c127 = arith.constant 127 : index
    %55 = vector.load %arg9[%c0_28, %c127] : memref<8x512xf32, #tpu.memory_space<vmem>>, vector<8x256xf32>
    %cst_29 = arith.constant 0.000000e+00 : f32
    %56 = vector.broadcast %cst_29 : f32 to vector<8x256xf32>
    %57 = arith.select %40, %55, %56 : vector<8x256xi1>, vector<8x256xf32>
    %c24 = arith.constant 24 : index
    %c0_30 = arith.constant 0 : index
    %58 = vector.load %arg10[%c24, %c0_30] : memref<72x256xf32, #tpu.memory_space<vmem>>, vector<8x256xf32>
    tpu.vector_store %arg10[%c24, %c0_30], %57 {strides = array<i32>} : memref<72x256xf32, #tpu.memory_space<vmem>>, vector<8x256xf32>,
    %c0_31 = arith.constant 0 : index
    %c128_32 = arith.constant 128 : index
    %59 = vector.load %arg9[%c0_31, %c128_32] : memref<8x512xf32, #tpu.memory_space<vmem>>, vector<8x256xf32>
    %c32 = arith.constant 32 : index
    %c0_33 = arith.constant 0 : index
    %60 = vector.load %arg10[%c32, %c0_33] : memref<72x256xf32, #tpu.memory_space<vmem>>, vector<8x256xf32>
    tpu.vector_store %arg10[%c32, %c0_33], %59 {strides = array<i32>} : memref<72x256xf32, #tpu.memory_space<vmem>>, vector<8x256xf32>,
    %c0_34 = arith.constant 0 : index
    %c129 = arith.constant 129 : index
    %61 = vector.load %arg9[%c0_34, %c129] : memref<8x512xf32, #tpu.memory_space<vmem>>, vector<8x256xf32>
    %cst_35 = arith.constant 0.000000e+00 : f32
    %62 = vector.broadcast %cst_35 : f32 to vector<8x256xf32>
    %63 = arith.select %44, %61, %62 : vector<8x256xi1>, vector<8x256xf32>
    %c40 = arith.constant 40 : index
    %c0_36 = arith.constant 0 : index
    %64 = vector.load %arg10[%c40, %c0_36] : memref<72x256xf32, #tpu.memory_space<vmem>>, vector<8x256xf32>
    tpu.vector_store %arg10[%c40, %c0_36], %63 {strides = array<i32>} : memref<72x256xf32, #tpu.memory_space<vmem>>, vector<8x256xf32>,
    %c0_37 = arith.constant 0 : index
    %c143 = arith.constant 143 : index
    %65 = vector.load %arg9[%c0_37, %c143] : memref<8x512xf32, #tpu.memory_space<vmem>>, vector<8x256xf32>
    %cst_38 = arith.constant 0.000000e+00 : f32
    %66 = vector.broadcast %cst_38 : f32 to vector<8x256xf32>
    %67 = arith.select %40, %65, %66 : vector<8x256xi1>, vector<8x256xf32>
    %c48 = arith.constant 48 : index
    %c0_39 = arith.constant 0 : index
    %68 = vector.load %arg10[%c48, %c0_39] : memref<72x256xf32, #tpu.memory_space<vmem>>, vector<8x256xf32>
    tpu.vector_store %arg10[%c48, %c0_39], %67 {strides = array<i32>} : memref<72x256xf32, #tpu.memory_space<vmem>>, vector<8x256xf32>,
    %c0_40 = arith.constant 0 : index
    %c144 = arith.constant 144 : index
    %69 = vector.load %arg9[%c0_40, %c144] : memref<8x512xf32, #tpu.memory_space<vmem>>, vector<8x256xf32>
    %c56 = arith.constant 56 : index
    %c0_41 = arith.constant 0 : index
    %70 = vector.load %arg10[%c56, %c0_41] : memref<72x256xf32, #tpu.memory_space<vmem>>, vector<8x256xf32>
    tpu.vector_store %arg10[%c56, %c0_41], %69 {strides = array<i32>} : memref<72x256xf32, #tpu.memory_space<vmem>>, vector<8x256xf32>,
    %c0_42 = arith.constant 0 : index
    %c145 = arith.constant 145 : index
    %71 = vector.load %arg9[%c0_42, %c145] : memref<8x512xf32, #tpu.memory_space<vmem>>, vector<8x256xf32>
    %cst_43 = arith.constant 0.000000e+00 : f32
    %72 = vector.broadcast %cst_43 : f32 to vector<8x256xf32>
    %73 = arith.select %44, %71, %72 : vector<8x256xi1>, vector<8x256xf32>
    %c64 = arith.constant 64 : index
    %c0_44 = arith.constant 0 : index
    %74 = vector.load %arg10[%c64, %c0_44] : memref<72x256xf32, #tpu.memory_space<vmem>>, vector<8x256xf32>
    tpu.vector_store %arg10[%c64, %c0_44], %73 {strides = array<i32>} : memref<72x256xf32, #tpu.memory_space<vmem>>, vector<8x256xf32>,
    %c0_45 = arith.constant 0 : index
    %c0_46 = arith.constant 0 : index
    %c0_47 = arith.constant 0 : index
    %75 = vector.load %arg4[%c0_45, %c0_46, %c0_47] : memref<3x8x72xf32, #tpu.memory_space<vmem>>, vector<1x8x72xf32>
    %76 = vector.shape_cast %75 : vector<1x8x72xf32> to vector<8x72xf32>
    %c0_48 = arith.constant 0 : index
    %c0_49 = arith.constant 0 : index
    %77 = vector.load %arg10[%c0_48, %c0_49] : memref<72x256xf32, #tpu.memory_space<vmem>>, vector<72x256xf32>
    %cst_50 = arith.constant dense<0.000000e+00> : vector<8x256xf32>
    %78 = tpu.matmul %76, %77, %cst_50 {dimension_numbers = #tpu.dot_dimension_numbers<[1], [0], [0], [1], [0, 0, 1, 1], [], []>} : vector<8x72xf32>, vector<72x256xf32>, vector<8x256xf32> -> vector<8x256xf32>
    %c0_51 = arith.constant 0 : index
    %c0_52 = arith.constant 0 : index
    %c0_53 = arith.constant 0 : index
    %79 = vector.load %arg5[%c0_51, %c0_52, %c0_53] : memref<3x8x1xf32, #tpu.memory_space<vmem>>, vector<1x8x1xf32>
    %80 = vector.shape_cast %79 : vector<1x8x1xf32> to vector<8x1xf32>
    %81 = vector.broadcast %80 : vector<8x1xf32> to vector<8x256xf32>
    %82 = arith.addf %78, %81 : vector<8x256xf32>
    %cst_54 = arith.constant 0.000000e+00 : f32
    %83 = vector.broadcast %cst_54 : f32 to vector<8x256xf32>
    %84 = arith.cmpf ogt, %82, %83 : vector<8x256xf32>
    %cst_55 = arith.constant 0.000000e+00 : f32
    %85 = vector.broadcast %cst_55 : f32 to vector<8x256xf32>
    %86 = arith.minimumf %82, %85 : vector<8x256xf32>
    %87 = math.exp %86 : vector<8x256xf32>
    %cst_56 = arith.constant 1.000000e+00 : f32
    %88 = vector.broadcast %cst_56 : f32 to vector<8x256xf32>
    %89 = arith.subf %87, %88 : vector<8x256xf32>
    %90 = arith.select %84, %82, %89 : vector<8x256xi1>, vector<8x256xf32>
    %c0_57 = arith.constant 0 : index
    %c0_58 = arith.constant 0 : index
    %c0_59 = arith.constant 0 : index
    %91 = vector.load %arg6[%c0_57, %c0_58, %c0_59] : memref<1x8x256xf32, #tpu.memory_space<vmem>>, vector<1x8x256xf32>
    %92 = vector.shape_cast %91 : vector<1x8x256xf32> to vector<8x256xf32>
    %93 = vector.shape_cast %90 : vector<8x256xf32> to vector<1x8x256xf32>
    tpu.vector_store %arg6[%c0_57, %c0_58, %c0_59], %93 {strides = array<i32>} : memref<1x8x256xf32, #tpu.memory_space<vmem>>, vector<1x8x256xf32>,
    %c0_60 = arith.constant 0 : index
    %c128_61 = arith.constant 128 : index
    %94 = vector.load %arg9[%c0_60, %c128_61] : memref<8x512xf32, #tpu.memory_space<vmem>>, vector<8x256xf32>
    %c0_62 = arith.constant 0 : index
    %c129_63 = arith.constant 129 : index
    %95 = vector.load %arg9[%c0_62, %c129_63] : memref<8x512xf32, #tpu.memory_space<vmem>>, vector<8x256xf32>
    %c0_64 = arith.constant 0 : index
    %c144_65 = arith.constant 144 : index
    %96 = vector.load %arg9[%c0_64, %c144_65] : memref<8x512xf32, #tpu.memory_space<vmem>>, vector<8x256xf32>
    %c0_66 = arith.constant 0 : index
    %c145_67 = arith.constant 145 : index
    %97 = vector.load %arg9[%c0_66, %c145_67] : memref<8x512xf32, #tpu.memory_space<vmem>>, vector<8x256xf32>
    %98 = arith.maximumf %94, %95 : vector<8x256xf32>
    %99 = arith.maximumf %96, %97 : vector<8x256xf32>
    %100 = arith.maximumf %98, %99 : vector<8x256xf32>
    %c0_68 = arith.constant 0 : index
    %c128_69 = arith.constant 128 : index
    %101 = vector.load %arg9[%c0_68, %c128_69] : memref<8x512xf32, #tpu.memory_space<vmem>>, vector<8x256xf32>
    tpu.vector_store %arg9[%c0_68, %c128_69], %100 {strides = array<i32>} : memref<8x512xf32, #tpu.memory_space<vmem>>, vector<8x256xf32>,
    %c2_i32 = arith.constant 2 : i32
    %102 = vector.broadcast %c2_i32 : i32 to vector<1x256xi32>
    %103 = arith.cmpi sge, %20, %102 : vector<1x256xi32>
    %104 = vector.shape_cast %103 : vector<1x256xi1> to vector<1x256xi1>
    %105 = vector.broadcast %104 : vector<1x256xi1> to vector<8x256xi1>
    %c14_i32 = arith.constant 14 : i32
    %106 = vector.broadcast %c14_i32 : i32 to vector<1x256xi32>
    %107 = arith.cmpi slt, %20, %106 : vector<1x256xi32>
    %108 = vector.shape_cast %107 : vector<1x256xi1> to vector<1x256xi1>
    %109 = vector.broadcast %108 : vector<1x256xi1> to vector<8x256xi1>
    %c0_70 = arith.constant 0 : index
    %c94 = arith.constant 94 : index
    %110 = vector.load %arg9[%c0_70, %c94] : memref<8x512xf32, #tpu.memory_space<vmem>>, vector<8x256xf32>
    %cst_71 = arith.constant 0.000000e+00 : f32
    %111 = vector.broadcast %cst_71 : f32 to vector<8x256xf32>
    %112 = arith.select %105, %110, %111 : vector<8x256xi1>, vector<8x256xf32>
    %c0_72 = arith.constant 0 : index
    %c0_73 = arith.constant 0 : index
    %113 = vector.load %arg10[%c0_72, %c0_73] : memref<72x256xf32, #tpu.memory_space<vmem>>, vector<8x256xf32>
    tpu.vector_store %arg10[%c0_72, %c0_73], %112 {strides = array<i32>} : memref<72x256xf32, #tpu.memory_space<vmem>>, vector<8x256xf32>,
    %c0_74 = arith.constant 0 : index
    %c96 = arith.constant 96 : index
    %114 = vector.load %arg9[%c0_74, %c96] : memref<8x512xf32, #tpu.memory_space<vmem>>, vector<8x256xf32>
    %c8_75 = arith.constant 8 : index
    %c0_76 = arith.constant 0 : index
    %115 = vector.load %arg10[%c8_75, %c0_76] : memref<72x256xf32, #tpu.memory_space<vmem>>, vector<8x256xf32>
    tpu.vector_store %arg10[%c8_75, %c0_76], %114 {strides = array<i32>} : memref<72x256xf32, #tpu.memory_space<vmem>>, vector<8x256xf32>,
    %c0_77 = arith.constant 0 : index
    %c98 = arith.constant 98 : index
    %116 = vector.load %arg9[%c0_77, %c98] : memref<8x512xf32, #tpu.memory_space<vmem>>, vector<8x256xf32>
    %cst_78 = arith.constant 0.000000e+00 : f32
    %117 = vector.broadcast %cst_78 : f32 to vector<8x256xf32>
    %118 = arith.select %109, %116, %117 : vector<8x256xi1>, vector<8x256xf32>
    %c16_79 = arith.constant 16 : index
    %c0_80 = arith.constant 0 : index
    %119 = vector.load %arg10[%c16_79, %c0_80] : memref<72x256xf32, #tpu.memory_space<vmem>>, vector<8x256xf32>
    tpu.vector_store %arg10[%c16_79, %c0_80], %118 {strides = array<i32>} : memref<72x256xf32, #tpu.memory_space<vmem>>, vector<8x256xf32>,
    %c0_81 = arith.constant 0 : index
    %c126 = arith.constant 126 : index
    %120 = vector.load %arg9[%c0_81, %c126] : memref<8x512xf32, #tpu.memory_space<vmem>>, vector<8x256xf32>
    %cst_82 = arith.constant 0.000000e+00 : f32
    %121 = vector.broadcast %cst_82 : f32 to vector<8x256xf32>
    %122 = arith.select %105, %120, %121 : vector<8x256xi1>, vector<8x256xf32>
    %c24_83 = arith.constant 24 : index
    %c0_84 = arith.constant 0 : index
    %123 = vector.load %arg10[%c24_83, %c0_84] : memref<72x256xf32, #tpu.memory_space<vmem>>, vector<8x256xf32>
    tpu.vector_store %arg10[%c24_83, %c0_84], %122 {strides = array<i32>} : memref<72x256xf32, #tpu.memory_space<vmem>>, vector<8x256xf32>,
    %c0_85 = arith.constant 0 : index
    %c128_86 = arith.constant 128 : index
    %124 = vector.load %arg9[%c0_85, %c128_86] : memref<8x512xf32, #tpu.memory_space<vmem>>, vector<8x256xf32>
    %c32_87 = arith.constant 32 : index
    %c0_88 = arith.constant 0 : index
    %125 = vector.load %arg10[%c32_87, %c0_88] : memref<72x256xf32, #tpu.memory_space<vmem>>, vector<8x256xf32>
    tpu.vector_store %arg10[%c32_87, %c0_88], %124 {strides = array<i32>} : memref<72x256xf32, #tpu.memory_space<vmem>>, vector<8x256xf32>,
    %c0_89 = arith.constant 0 : index
    %c130 = arith.constant 130 : index
    %126 = vector.load %arg9[%c0_89, %c130] : memref<8x512xf32, #tpu.memory_space<vmem>>, vector<8x256xf32>
    %cst_90 = arith.constant 0.000000e+00 : f32
    %127 = vector.broadcast %cst_90 : f32 to vector<8x256xf32>
    %128 = arith.select %109, %126, %127 : vector<8x256xi1>, vector<8x256xf32>
    %c40_91 = arith.constant 40 : index
    %c0_92 = arith.constant 0 : index
    %129 = vector.load %arg10[%c40_91, %c0_92] : memref<72x256xf32, #tpu.memory_space<vmem>>, vector<8x256xf32>
    tpu.vector_store %arg10[%c40_91, %c0_92], %128 {strides = array<i32>} : memref<72x256xf32, #tpu.memory_space<vmem>>, vector<8x256xf32>,
    %c0_93 = arith.constant 0 : index
    %c158 = arith.constant 158 : index
    %130 = vector.load %arg9[%c0_93, %c158] : memref<8x512xf32, #tpu.memory_space<vmem>>, vector<8x256xf32>
    %cst_94 = arith.constant 0.000000e+00 : f32
    %131 = vector.broadcast %cst_94 : f32 to vector<8x256xf32>
    %132 = arith.select %105, %130, %131 : vector<8x256xi1>, vector<8x256xf32>
    %c48_95 = arith.constant 48 : index
    %c0_96 = arith.constant 0 : index
    %133 = vector.load %arg10[%c48_95, %c0_96] : memref<72x256xf32, #tpu.memory_space<vmem>>, vector<8x256xf32>
    tpu.vector_store %arg10[%c48_95, %c0_96], %132 {strides = array<i32>} : memref<72x256xf32, #tpu.memory_space<vmem>>, vector<8x256xf32>,
    %c0_97 = arith.constant 0 : index
    %c160 = arith.constant 160 : index
    %134 = vector.load %arg9[%c0_97, %c160] : memref<8x512xf32, #tpu.memory_space<vmem>>, vector<8x256xf32>
    %c56_98 = arith.constant 56 : index
    %c0_99 = arith.constant 0 : index
    %135 = vector.load %arg10[%c56_98, %c0_99] : memref<72x256xf32, #tpu.memory_space<vmem>>, vector<8x256xf32>
    tpu.vector_store %arg10[%c56_98, %c0_99], %134 {strides = array<i32>} : memref<72x256xf32, #tpu.memory_space<vmem>>, vector<8x256xf32>,
    %c0_100 = arith.constant 0 : index
    %c162 = arith.constant 162 : index
    %136 = vector.load %arg9[%c0_100, %c162] : memref<8x512xf32, #tpu.memory_space<vmem>>, vector<8x256xf32>
    %cst_101 = arith.constant 0.000000e+00 : f32
    %137 = vector.broadcast %cst_101 : f32 to vector<8x256xf32>
    %138 = arith.select %109, %136, %137 : vector<8x256xi1>, vector<8x256xf32>
    %c64_102 = arith.constant 64 : index
    %c0_103 = arith.constant 0 : index
    %139 = vector.load %arg10[%c64_102, %c0_103] : memref<72x256xf32, #tpu.memory_space<vmem>>, vector<8x256xf32>
    tpu.vector_store %arg10[%c64_102, %c0_103], %138 {strides = array<i32>} : memref<72x256xf32, #tpu.memory_space<vmem>>, vector<8x256xf32>,
    %c1 = arith.constant 1 : index
    %c0_104 = arith.constant 0 : index
    %c0_105 = arith.constant 0 : index
    %140 = vector.load %arg4[%c1, %c0_104, %c0_105] : memref<3x8x72xf32, #tpu.memory_space<vmem>>, vector<1x8x72xf32>
    %141 = vector.shape_cast %140 : vector<1x8x72xf32> to vector<8x72xf32>
    %c0_106 = arith.constant 0 : index
    %c0_107 = arith.constant 0 : index
    %142 = vector.load %arg10[%c0_106, %c0_107] : memref<72x256xf32, #tpu.memory_space<vmem>>, vector<72x256xf32>
    %cst_108 = arith.constant dense<0.000000e+00> : vector<8x256xf32>
    %143 = tpu.matmul %141, %142, %cst_108 {dimension_numbers = #tpu.dot_dimension_numbers<[1], [0], [0], [1], [0, 0, 1, 1], [], []>} : vector<8x72xf32>, vector<72x256xf32>, vector<8x256xf32> -> vector<8x256xf32>
    %c1_109 = arith.constant 1 : index
    %c0_110 = arith.constant 0 : index
    %c0_111 = arith.constant 0 : index
    %144 = vector.load %arg5[%c1_109, %c0_110, %c0_111] : memref<3x8x1xf32, #tpu.memory_space<vmem>>, vector<1x8x1xf32>
    %145 = vector.shape_cast %144 : vector<1x8x1xf32> to vector<8x1xf32>
    %146 = vector.broadcast %145 : vector<8x1xf32> to vector<8x256xf32>
    %147 = arith.addf %143, %146 : vector<8x256xf32>
    %cst_112 = arith.constant 0.000000e+00 : f32
    %148 = vector.broadcast %cst_112 : f32 to vector<8x256xf32>
    %149 = arith.cmpf ogt, %147, %148 : vector<8x256xf32>
    %cst_113 = arith.constant 0.000000e+00 : f32
    %150 = vector.broadcast %cst_113 : f32 to vector<8x256xf32>
    %151 = arith.minimumf %147, %150 : vector<8x256xf32>
    %152 = math.exp %151 : vector<8x256xf32>
    %cst_114 = arith.constant 1.000000e+00 : f32
    %153 = vector.broadcast %cst_114 : f32 to vector<8x256xf32>
    %154 = arith.subf %152, %153 : vector<8x256xf32>
    %155 = arith.select %149, %147, %154 : vector<8x256xi1>, vector<8x256xf32>
    %c0_115 = arith.constant 0 : index
    %c0_116 = arith.constant 0 : index
    %c0_117 = arith.constant 0 : index
    %156 = vector.load %arg7[%c0_115, %c0_116, %c0_117] : memref<1x8x256xf32, #tpu.memory_space<vmem>>, vector<1x8x256xf32>
    %157 = vector.shape_cast %156 : vector<1x8x256xf32> to vector<8x256xf32>
    %158 = vector.shape_cast %155 : vector<8x256xf32> to vector<1x8x256xf32>
    tpu.vector_store %arg7[%c0_115, %c0_116, %c0_117], %158 {strides = array<i32>} : memref<1x8x256xf32, #tpu.memory_space<vmem>>, vector<1x8x256xf32>,
    %c0_118 = arith.constant 0 : index
    %c128_119 = arith.constant 128 : index
    %159 = vector.load %arg9[%c0_118, %c128_119] : memref<8x512xf32, #tpu.memory_space<vmem>>, vector<8x256xf32>
    %c0_120 = arith.constant 0 : index
    %c130_121 = arith.constant 130 : index
    %160 = vector.load %arg9[%c0_120, %c130_121] : memref<8x512xf32, #tpu.memory_space<vmem>>, vector<8x256xf32>
    %c0_122 = arith.constant 0 : index
    %c160_123 = arith.constant 160 : index
    %161 = vector.load %arg9[%c0_122, %c160_123] : memref<8x512xf32, #tpu.memory_space<vmem>>, vector<8x256xf32>
    %c0_124 = arith.constant 0 : index
    %c162_125 = arith.constant 162 : index
    %162 = vector.load %arg9[%c0_124, %c162_125] : memref<8x512xf32, #tpu.memory_space<vmem>>, vector<8x256xf32>
    %163 = arith.maximumf %159, %160 : vector<8x256xf32>
    %164 = arith.maximumf %161, %162 : vector<8x256xf32>
    %165 = arith.maximumf %163, %164 : vector<8x256xf32>
    %c0_126 = arith.constant 0 : index
    %c128_127 = arith.constant 128 : index
    %166 = vector.load %arg9[%c0_126, %c128_127] : memref<8x512xf32, #tpu.memory_space<vmem>>, vector<8x256xf32>
    tpu.vector_store %arg9[%c0_126, %c128_127], %165 {strides = array<i32>} : memref<8x512xf32, #tpu.memory_space<vmem>>, vector<8x256xf32>,
    %c4_i32 = arith.constant 4 : i32
    %167 = vector.broadcast %c4_i32 : i32 to vector<1x256xi32>
    %168 = arith.cmpi sge, %20, %167 : vector<1x256xi32>
    %169 = vector.shape_cast %168 : vector<1x256xi1> to vector<1x256xi1>
    %170 = vector.broadcast %169 : vector<1x256xi1> to vector<8x256xi1>
    %c12_i32 = arith.constant 12 : i32
    %171 = vector.broadcast %c12_i32 : i32 to vector<1x256xi32>
    %172 = arith.cmpi slt, %20, %171 : vector<1x256xi32>
    %173 = vector.shape_cast %172 : vector<1x256xi1> to vector<1x256xi1>
    %174 = vector.broadcast %173 : vector<1x256xi1> to vector<8x256xi1>
    %c0_128 = arith.constant 0 : index
    %c60 = arith.constant 60 : index
    %175 = vector.load %arg9[%c0_128, %c60] : memref<8x512xf32, #tpu.memory_space<vmem>>, vector<8x256xf32>
    %cst_129 = arith.constant 0.000000e+00 : f32
    %176 = vector.broadcast %cst_129 : f32 to vector<8x256xf32>
    %177 = arith.select %170, %175, %176 : vector<8x256xi1>, vector<8x256xf32>
    %c0_130 = arith.constant 0 : index
    %c0_131 = arith.constant 0 : index
    %178 = vector.load %arg10[%c0_130, %c0_131] : memref<72x256xf32, #tpu.memory_space<vmem>>, vector<8x256xf32>
    tpu.vector_store %arg10[%c0_130, %c0_131], %177 {strides = array<i32>} : memref<72x256xf32, #tpu.memory_space<vmem>>, vector<8x256xf32>,
    %c0_132 = arith.constant 0 : index
    %c64_133 = arith.constant 64 : index
    %179 = vector.load %arg9[%c0_132, %c64_133] : memref<8x512xf32, #tpu.memory_space<vmem>>, vector<8x256xf32>
    %c8_134 = arith.constant 8 : index
    %c0_135 = arith.constant 0 : index
    %180 = vector.load %arg10[%c8_134, %c0_135] : memref<72x256xf32, #tpu.memory_space<vmem>>, vector<8x256xf32>
    tpu.vector_store %arg10[%c8_134, %c0_135], %179 {strides = array<i32>} : memref<72x256xf32, #tpu.memory_space<vmem>>, vector<8x256xf32>,
    %c0_136 = arith.constant 0 : index
    %c68 = arith.constant 68 : index
    %181 = vector.load %arg9[%c0_136, %c68] : memref<8x512xf32, #tpu.memory_space<vmem>>, vector<8x256xf32>
    %cst_137 = arith.constant 0.000000e+00 : f32
    %182 = vector.broadcast %cst_137 : f32 to vector<8x256xf32>
    %183 = arith.select %174, %181, %182 : vector<8x256xi1>, vector<8x256xf32>
    %c16_138 = arith.constant 16 : index
    %c0_139 = arith.constant 0 : index
    %184 = vector.load %arg10[%c16_138, %c0_139] : memref<72x256xf32, #tpu.memory_space<vmem>>, vector<8x256xf32>
    tpu.vector_store %arg10[%c16_138, %c0_139], %183 {strides = array<i32>} : memref<72x256xf32, #tpu.memory_space<vmem>>, vector<8x256xf32>,
    %c0_140 = arith.constant 0 : index
    %c124 = arith.constant 124 : index
    %185 = vector.load %arg9[%c0_140, %c124] : memref<8x512xf32, #tpu.memory_space<vmem>>, vector<8x256xf32>
    %cst_141 = arith.constant 0.000000e+00 : f32
    %186 = vector.broadcast %cst_141 : f32 to vector<8x256xf32>
    %187 = arith.select %170, %185, %186 : vector<8x256xi1>, vector<8x256xf32>
    %c24_142 = arith.constant 24 : index
    %c0_143 = arith.constant 0 : index
    %188 = vector.load %arg10[%c24_142, %c0_143] : memref<72x256xf32, #tpu.memory_space<vmem>>, vector<8x256xf32>
    tpu.vector_store %arg10[%c24_142, %c0_143], %187 {strides = array<i32>} : memref<72x256xf32, #tpu.memory_space<vmem>>, vector<8x256xf32>,
    %c0_144 = arith.constant 0 : index
    %c128_145 = arith.constant 128 : index
    %189 = vector.load %arg9[%c0_144, %c128_145] : memref<8x512xf32, #tpu.memory_space<vmem>>, vector<8x256xf32>
    %c32_146 = arith.constant 32 : index
    %c0_147 = arith.constant 0 : index
    %190 = vector.load %arg10[%c32_146, %c0_147] : memref<72x256xf32, #tpu.memory_space<vmem>>, vector<8x256xf32>
    tpu.vector_store %arg10[%c32_146, %c0_147], %189 {strides = array<i32>} : memref<72x256xf32, #tpu.memory_space<vmem>>, vector<8x256xf32>,
    %c0_148 = arith.constant 0 : index
    %c132 = arith.constant 132 : index
    %191 = vector.load %arg9[%c0_148, %c132] : memref<8x512xf32, #tpu.memory_space<vmem>>, vector<8x256xf32>
    %cst_149 = arith.constant 0.000000e+00 : f32
    %192 = vector.broadcast %cst_149 : f32 to vector<8x256xf32>
    %193 = arith.select %174, %191, %192 : vector<8x256xi1>, vector<8x256xf32>
    %c40_150 = arith.constant 40 : index
    %c0_151 = arith.constant 0 : index
    %194 = vector.load %arg10[%c40_150, %c0_151] : memref<72x256xf32, #tpu.memory_space<vmem>>, vector<8x256xf32>
    tpu.vector_store %arg10[%c40_150, %c0_151], %193 {strides = array<i32>} : memref<72x256xf32, #tpu.memory_space<vmem>>, vector<8x256xf32>,
    %c0_152 = arith.constant 0 : index
    %c188 = arith.constant 188 : index
    %195 = vector.load %arg9[%c0_152, %c188] : memref<8x512xf32, #tpu.memory_space<vmem>>, vector<8x256xf32>
    %cst_153 = arith.constant 0.000000e+00 : f32
    %196 = vector.broadcast %cst_153 : f32 to vector<8x256xf32>
    %197 = arith.select %170, %195, %196 : vector<8x256xi1>, vector<8x256xf32>
    %c48_154 = arith.constant 48 : index
    %c0_155 = arith.constant 0 : index
    %198 = vector.load %arg10[%c48_154, %c0_155] : memref<72x256xf32, #tpu.memory_space<vmem>>, vector<8x256xf32>
    tpu.vector_store %arg10[%c48_154, %c0_155], %197 {strides = array<i32>} : memref<72x256xf32, #tpu.memory_space<vmem>>, vector<8x256xf32>,
    %c0_156 = arith.constant 0 : index
    %c192 = arith.constant 192 : index
    %199 = vector.load %arg9[%c0_156, %c192] : memref<8x512xf32, #tpu.memory_space<vmem>>, vector<8x256xf32>
    %c56_157 = arith.constant 56 : index
    %c0_158 = arith.constant 0 : index
    %200 = vector.load %arg10[%c56_157, %c0_158] : memref<72x256xf32, #tpu.memory_space<vmem>>, vector<8x256xf32>
    tpu.vector_store %arg10[%c56_157, %c0_158], %199 {strides = array<i32>} : memref<72x256xf32, #tpu.memory_space<vmem>>, vector<8x256xf32>,
    %c0_159 = arith.constant 0 : index
    %c196 = arith.constant 196 : index
    %201 = vector.load %arg9[%c0_159, %c196] : memref<8x512xf32, #tpu.memory_space<vmem>>, vector<8x256xf32>
    %cst_160 = arith.constant 0.000000e+00 : f32
    %202 = vector.broadcast %cst_160 : f32 to vector<8x256xf32>
    %203 = arith.select %174, %201, %202 : vector<8x256xi1>, vector<8x256xf32>
    %c64_161 = arith.constant 64 : index
    %c0_162 = arith.constant 0 : index
    %204 = vector.load %arg10[%c64_161, %c0_162] : memref<72x256xf32, #tpu.memory_space<vmem>>, vector<8x256xf32>
    tpu.vector_store %arg10[%c64_161, %c0_162], %203 {strides = array<i32>} : memref<72x256xf32, #tpu.memory_space<vmem>>, vector<8x256xf32>,
    %c2 = arith.constant 2 : index
    %c0_163 = arith.constant 0 : index
    %c0_164 = arith.constant 0 : index
    %205 = vector.load %arg4[%c2, %c0_163, %c0_164] : memref<3x8x72xf32, #tpu.memory_space<vmem>>, vector<1x8x72xf32>
    %206 = vector.shape_cast %205 : vector<1x8x72xf32> to vector<8x72xf32>
    %c0_165 = arith.constant 0 : index
    %c0_166 = arith.constant 0 : index
    %207 = vector.load %arg10[%c0_165, %c0_166] : memref<72x256xf32, #tpu.memory_space<vmem>>, vector<72x256xf32>
    %cst_167 = arith.constant dense<0.000000e+00> : vector<8x256xf32>
    %208 = tpu.matmul %206, %207, %cst_167 {dimension_numbers = #tpu.dot_dimension_numbers<[1], [0], [0], [1], [0, 0, 1, 1], [], []>} : vector<8x72xf32>, vector<72x256xf32>, vector<8x256xf32> -> vector<8x256xf32>
    %c2_168 = arith.constant 2 : index
    %c0_169 = arith.constant 0 : index
    %c0_170 = arith.constant 0 : index
    %209 = vector.load %arg5[%c2_168, %c0_169, %c0_170] : memref<3x8x1xf32, #tpu.memory_space<vmem>>, vector<1x8x1xf32>
    %210 = vector.shape_cast %209 : vector<1x8x1xf32> to vector<8x1xf32>
    %211 = vector.broadcast %210 : vector<8x1xf32> to vector<8x256xf32>
    %212 = arith.addf %208, %211 : vector<8x256xf32>
    %cst_171 = arith.constant 0.000000e+00 : f32
    %213 = vector.broadcast %cst_171 : f32 to vector<8x256xf32>
    %214 = arith.cmpf ogt, %212, %213 : vector<8x256xf32>
    %cst_172 = arith.constant 0.000000e+00 : f32
    %215 = vector.broadcast %cst_172 : f32 to vector<8x256xf32>
    %216 = arith.minimumf %212, %215 : vector<8x256xf32>
    %217 = math.exp %216 : vector<8x256xf32>
    %cst_173 = arith.constant 1.000000e+00 : f32
    %218 = vector.broadcast %cst_173 : f32 to vector<8x256xf32>
    %219 = arith.subf %217, %218 : vector<8x256xf32>
    %220 = arith.select %214, %212, %219 : vector<8x256xi1>, vector<8x256xf32>
    %c0_174 = arith.constant 0 : index
    %c0_175 = arith.constant 0 : index
    %c0_176 = arith.constant 0 : index
    %221 = vector.load %arg8[%c0_174, %c0_175, %c0_176] : memref<1x8x256xf32, #tpu.memory_space<vmem>>, vector<1x8x256xf32>
    %222 = vector.shape_cast %221 : vector<1x8x256xf32> to vector<8x256xf32>
    %223 = vector.shape_cast %220 : vector<8x256xf32> to vector<1x8x256xf32>
    tpu.vector_store %arg8[%c0_174, %c0_175, %c0_176], %223 {strides = array<i32>} : memref<1x8x256xf32, #tpu.memory_space<vmem>>, vector<1x8x256xf32>,
    return
  }
  func.func @transform_0(%arg0: i32) -> (i32, i32, i32) {
    %c0_i32 = arith.constant 0 : i32
    %c0_i32_0 = arith.constant 0 : i32
    %c0_i32_1 = arith.constant 0 : i32
    return %arg0, %c0_i32, %c0_i32_0 : i32, i32, i32
  }
  func.func @transform_1(%arg0: i32) -> (i32, i32) {
    %c0_i32 = arith.constant 0 : i32
    %c0_i32_0 = arith.constant 0 : i32
    %c0_i32_1 = arith.constant 0 : i32
    return %c0_i32, %c0_i32_0 : i32, i32
  }
  func.func @transform_2(%arg0: i32) -> (i32, i32) {
    %c0_i32 = arith.constant 0 : i32
    %c0_i32_0 = arith.constant 0 : i32
    %c0_i32_1 = arith.constant 0 : i32
    return %c0_i32, %c0_i32_0 : i32, i32
  }
  func.func @transform_3(%arg0: i32) -> (i32, i32, i32) {
    %c0_i32 = arith.constant 0 : i32
    %c0_i32_0 = arith.constant 0 : i32
    %c0_i32_1 = arith.constant 0 : i32
    %c0_i32_2 = arith.constant 0 : i32
    return %c0_i32, %c0_i32_0, %c0_i32_1 : i32, i32, i32
  }
  func.func @transform_4(%arg0: i32) -> (i32, i32, i32) {
    %c0_i32 = arith.constant 0 : i32
    %c0_i32_0 = arith.constant 0 : i32
    %c0_i32_1 = arith.constant 0 : i32
    %c0_i32_2 = arith.constant 0 : i32
    return %c0_i32, %c0_i32_0, %c0_i32_1 : i32, i32, i32
  }
  func.func @transform_5(%arg0: i32) -> (i32, i32, i32) {
    %c0_i32 = arith.constant 0 : i32
    %c0_i32_0 = arith.constant 0 : i32
    %c0_i32_1 = arith.constant 0 : i32
    return %arg0, %c0_i32, %c0_i32_0 : i32, i32, i32
  }
  func.func @transform_6(%arg0: i32) -> (i32, i32, i32) {
    %c0_i32 = arith.constant 0 : i32
    %c0_i32_0 = arith.constant 0 : i32
    %c0_i32_1 = arith.constant 0 : i32
    return %arg0, %c0_i32, %c0_i32_0 : i32, i32, i32
  }
  func.func @transform_7(%arg0: i32) -> (i32, i32, i32) {
    %c0_i32 = arith.constant 0 : i32
    %c0_i32_0 = arith.constant 0 : i32
    %c0_i32_1 = arith.constant 0 : i32
    return %arg0, %c0_i32, %c0_i32_0 : i32, i32, i32
  }
}

</mosaic_0001>

<bundles_post_ra>
// kernel: _lambda_.1
= control target key start
LH: loop header
LB: loop body
LE: loop exit
PB: predicated region body
PF: predicated region fallthrough
CT: control target
= control target key end

     0   :  { %s1903_s24 = smov 0   ;;  %s2283_s0 = inlined_call_operand.vmem [shape: f32[2,4,256], index: 0, kind: input, shape index: {}]   ;;  %s2284_s1 = inlined_call_operand.vmem [shape: f32[8,4], index: 1, kind: input, shape index: {}]   ;;  %s2285_s2 = inlined_call_operand.vmem [shape: f32[8,1], index: 2, kind: input, shape index: {}]   ;;  %s2286_s3 = inlined_call_operand.vmem [shape: f32[3,8,72], index: 3, kind: input, shape index: {}]   ;;  %s2287_s4 = inlined_call_operand.vmem [shape: f32[3,8,1], index: 4, kind: input, shape index: {}]   ;;  %s2288_s5 = inlined_call_operand.vmem [shape: f32[2,8,256], index: 5, kind: output, shape index: {0}]   ;;  %s2289_s6 = inlined_call_operand.vmem [shape: f32[2,8,256], index: 6, kind: output, shape index: {1}]   ;;  %s2290_s7 = inlined_call_operand.vmem [shape: f32[2,8,256], index: 7, kind: output, shape index: {2}]  }
   0x1 LB: > { %s1520_s25 = sadd.s32 4294967295, %s1837_s24   ;;  %p1524_p0 = scmp.ge.s32.totalorder %s1837_s24, 1  ;;  %s1837_s24 = sphi %s1903_s24, %s18_s24  }
   0x2   : > { %p242_p1 = scmp.lt.s32.totalorder %s1837_s24, 3 }
   0x4   : > { %p243_p2 = pnand %p1524_p0, %p242_p1 }
   0x5   : > { %p284_p3 = scmp.lt.s32.totalorder (!%p243_p2), %s1520_s25, 1  ;;  %v1839_v0 = vmov (!%p243_p2), 0.0   ;;  %v1840_v1 = vmov (!%p243_p2), 0   ;;  %v335_v2 = vld [vmem:[%s2285_s2] sm:$0xff] (!%p243_p2)  ;;  %vm347_vm0 = vcmask (!%p243_p2), 1043456   ;;  %vm343_vm1 = vcmask (!%p243_p2), 31744  }
   0x6   : > { %246 = sbr.rel (%p243_p2) target bundleno = 1139 (0x473), region = 40  ;;  %416 = vmatprep.mubr.f32.mxu0 (!%p243_p2), %v1839_v0  ;;  %1697 = vset.pattern.permute.xlu0 (!%p243_p2), %v1840_v1  ;;  %v333_v5 = vld [vmem:[%s2284_s1] sm:$0xff] (!%p243_p2)  ;;  %s1841_s11 = smov (!%p243_p2), 127   ;;  %vm547_vm4 = vcmask (!%p243_p2), 1039360   ;;  %vm589_vm5 = vcmask (!%p243_p2), 916480   ;;  %vm882_vm6 = vcmask (!%p243_p2), 1031168   ;;  %v306_v51 = vlaneseq (!%p243_p2) }
   0x7   : > { %338 = vperm.xlu0 (!%p243_p2), %1697, %v335_v2   ;;  %710 = vmatprep.mubr.f32.mxu1 (!%p243_p2), %v1839_v0  ;;  %s1842_s12 = smov (!%p243_p2), 112   ;;  %s1843_s13 = smov (!%p243_p2), 126   ;;  %vm461_vm7 = vcmask (!%p243_p2), 138240   ;;  %vm482_vm8 = vcmask (!%p243_p2), 130048   ;;  %vm1858_vm11 = vmmov (!%p243_p2), 1   ;;  %vm501_vm14 = vcmask (!%p243_p2), 121856  }
   0x8   : > { %1813 = vset.pattern.permute.xlu1 (!%p243_p2), %v1840_v1  ;;  %s1844_s14 = smov (!%p243_p2), 17   ;;  %s1845_s15 = smov (!%p243_p2), 15   ;;  %v307_v53 = vand.u32 (!%p243_p2), 127, %v306_v51 }
   0x9   : > { %s1846_s16 = smov (!%p243_p2), 96   ;;  %s1847_s17 = smov (!%p243_p2), 16  }
   0xa   : > { %s1848_s18 = smov (!%p243_p2), 113   ;;  %s1849_s19 = smov (!%p243_p2), 1   ;;  %v308_v54 = vadd.s32 (!%p243_p2), 128, %v307_v53  ;;  %v2010_v59 = vand.u32 (!%p243_p2), 15, %v307_v53 }
   0xb   : > { %s1850_s20 = smov (!%p243_p2), 111   ;;  %s1851_s21 = smov (!%p243_p2), 34  }
   0xc   : > { %s1852_s22 = smov (!%p243_p2), 32   ;;  %s1853_s23 = smov (!%p243_p2), 2   ;;  %v2008_v57 = vand.u32 (!%p243_p2), 15, %v308_v54  ;;  %vm437_vm10 = vcmp.ge.s32.totalorder (!%p243_p2), %v2010_v59, 1 }
   0xd   : > { %s2307_s25 = smov (!%p284_p3, %s1520_s25), 1  ;;  %s1854_s26 = smov 4   ;;  %vm2026_vm13 = vmpackc.low %vm1858_vm11, %vm437_vm10 }
   0xe   : > { %s1553_s28 = sshll.u32 %s2307_s25, 3  ;;  %s1855_s27 = smov 30   ;;  %vm438_vm9 = vcmp.ge.s32.totalorder %v2008_v57, 1  ;;  %vm444_vm15 = vcmp.lt.s32.totalorder %v2008_v57, 15 }
   0xf   : > { %s288_s8 = scalar_lea.vmem %s2283_s0, %s1553_s28  ;;  %s1856_s28 = smov 60   ;;  %vm2017_vm12 = vmpackc.low %vm1858_vm11, %vm438_vm9 }
  0x10   : > { %v334_v3 = vld [vmem:[%s288_s8] sm:$0xff]  ;;  %s1857_s29 = smov 98   ;;  %s1859_s30 = smov 64  }
  0x11   : > { %v342_v4 = vcombine.high %v334_v3, %v334_v3  ;;  %s1860_s8 = smov 68   ;;  %s1861_s9 = smov 94  }
  0x13   : > { %1533 = vmatprep.subr.msk.mxu0 %vm347_vm0, %v342_v4 }
  0x14   : > { %1534 = vmatpush1.msk.msra.mxu0 %vm347_vm0, %v334_v3  ;;  %vm522_vm0 = vcmask 7168  }
  0x15   : > { %1535 = vmatmul.mubr.msk.f32.vlgmr.msra.gmra.mrb[0].mxu0 %vm343_vm1, %v333_v5 }
  0x16   : > { %1046 = vmatprep.mubr.f32.mxu0 %v1839_v0 }
  0x86   : > { %v339_v6 = vpop.permute.xlu0 %338 }
  0xe8   : > { %v418_v7 = vpop.f32.mrb[0].mxu0 }
  0xe9   : > { %v419_v8 = vadd.f32 %v418_v7, %v339_v6  ;;  %v420_v9 = vpop.f32.mrb[1].mxu0 }
  0xea   : > { %v421_v10 = vadd.f32 %v420_v9, %v339_v6 }
  0xeb   : > { %v425_v11 = vmin.f32 %v419_v8, 0.0  ;;  %vm423_vm2 = vcmp.gt.f32.partialorder %v419_v8, 0.0 }
  0xec   : > { %v426_v12 = vmin.f32 %v421_v10, 0.0  ;;  %vm424_vm3 = vcmp.gt.f32.partialorder %v421_v10, 0.0 }
  0xed   : > { %v427_v13 = vmul.f32 1.442695, %v425_v11 }
  0xee   : > { %v429_v14 = vmul.f32 1.442695, %v426_v12 }
  0xef   : > { %1815 = vpow2.f32 %v427_v13 }
  0xf0   : > { %1817 = vpow2.f32 %v429_v14 }
  0xf9   : > { %v1816_v15 = vpop.eup %1815 }
  0xfa   : > { %v1818_v16 = vpop.eup %1817  ;;  %v1536_v17 = vadd.f32 -1.0, %v1816_v15 }
  0xfb   : > { %v1537_v18 = vadd.f32 -1.0, %v1818_v16 }
  0xfc   : > { %v1927_v19 = vsel %vm423_vm2, %v419_v8, %v1536_v17  ;;  %vm443_vm2 = vcmp.lt.s32.totalorder %v2010_v59, 15 }
  0xfd   : > { %v1929_v20 = vsel %vm424_vm3, %v421_v10, %v1537_v18  ;;  %739 = vrot.lane.b32.xlu0 %v1927_v19, %s1841_s11  ;;  %vm1600_vm3 = vmpackc.low %vm438_vm9, %vm444_vm15 }
  0xfe   : > { %741 = vrot.lane.b32.xlu1 %v1929_v20, %s1841_s11  ;;  %v1698_v36 = vpack.i.bf16 %v1929_v20, %v1927_v19  ;;  %v1718_v37 = vpack.i.bf16 %v1839_v0, %v1929_v20  ;;  %vm1606_vm9 = vmpackc.low %vm444_vm15, %vm1858_vm11 }
 0x102   : > { %743 = vrot.lane.b32.xlu1 %v1839_v0, %s1841_s11 }
 0x16f   : > { %v740_v21 = vpop.permute.xlu0 %739 }
 0x170   : > { %v742_v22 = vpop.permute.xlu1 %741 }
 0x171   : > { %v745_v23 = vsel %vm547_vm4, %v740_v21, %v742_v22 }
 0x172   : > { %v749_v24 = vmax.f32 %v1927_v19, %v745_v23 }
 0x174   : > { %v744_v25 = vpop.permute.xlu1 %743  ;;  %758 = vrot.lane.b32.xlu0 %v749_v24, %s1842_s12 }
 0x175   : > { %v746_v26 = vsel %vm547_vm4, %v742_v22, %v744_v25  ;;  %v754_v27 = vmax.f32 %v744_v25, 0.0 }
 0x176   : > { %v750_v28 = vmax.f32 %v1929_v20, %v746_v26 }
 0x178   : > { %760 = vrot.lane.b32.xlu1 %v750_v28, %s1842_s12  ;;  %762 = vrot.lane.b32.xlu0 %v754_v27, %s1842_s12 }
 0x1e6   : > { %v759_v29 = vpop.permute.xlu0 %758 }
 0x1ea   : > { %v761_v30 = vpop.permute.xlu1 %760  ;;  %v763_v31 = vpop.permute.xlu0 %762 }
 0x1eb   : > { %v764_v32 = vsel %vm589_vm5, %v759_v29, %v761_v30  ;;  %v765_v33 = vsel %vm589_vm5, %v761_v30, %v763_v31 }
 0x1ec   : > { %v1946_v34 = vmax.f32 %v749_v24, %v764_v32  ;;  %v1948_v35 = vmax.f32 %v750_v28, %v765_v33 }
 0x1ee   : > { %1075 = vrot.lane.b32.xlu1 %v1946_v34, %s1843_s13  ;;  %1077 = vrot.lane.b32.xlu0 %v1948_v35, %s1843_s13  ;;  %v1733_v45 = vpack.i.bf16 %v1948_v35, %v1946_v34  ;;  %v1763_v47 = vpack.i.bf16 %v1839_v0, %v1948_v35 }
 0x1f2   : > { %1079 = vrot.lane.b32.xlu1 %v1839_v0, %s1843_s13 }
 0x1f6   : > { %1699 = vrot.lane.b32.xlu1 %v1698_v36, %s1844_s14 }
 0x1fa   : > { %455 = vrot.lane.b32.xlu1 %v1839_v0, %s1844_s14 }
 0x1fe   : > { %1709 = vrot.lane.b32.xlu1 %v1698_v36, %s1845_s15 }
 0x202   : > { %495 = vrot.lane.b32.xlu1 %v1839_v0, %s1845_s15 }
 0x206   : > { %1719 = vrot.lane.b32.xlu1 %v1718_v37, %s1841_s11 }
 0x260   : > { %v1076_v38 = vpop.permute.xlu1 %1075  ;;  %v1078_v39 = vpop.permute.xlu0 %1077 }
 0x261   : > { %v1081_v44 = vsel %vm882_vm6, %v1076_v38, %v1078_v39 }
 0x262   : > { %v1978_v46 = vmax.f32 %v1946_v34, %v1081_v44 }
 0x264   : > { %v1080_v40 = vpop.permute.xlu1 %1079 }
 0x265   : > { %v1082_v41 = vsel %vm882_vm6, %v1078_v39, %v1080_v40  ;;  %v1090_v42 = vmax.f32 %v1080_v40, 0.0 }
 0x266   : > { %v1965_v43 = vmax.f32 %v1948_v35, %v1082_v41 }
 0x267   : > { %1098 = vrot.lane.b32.xlu0 %v1090_v42, %s1846_s16 }
 0x268   : > { %1096 = vrot.lane.b32.xlu1 %v1965_v43, %s1846_s16  ;;  %v1700_v48 = vpop.permute.xlu1 %1699 }
 0x269   : > { %v1702_v60 = vunpack.i.h.bf16 %v1700_v48  ;;  %v1701_v61 = vunpack.i.l.bf16 %v1700_v48 }
 0x26b   : > { %1704 = vrot.lane.b32.xlu0 %v1698_v36, %s1847_s17  ;;  %v463_v2 = vsel %vm461_vm7, %v1701_v61, %v1702_v60 }
 0x26c   : > { %1724 = vrot.lane.b32.xlu1 %v1718_v37, %s1848_s18  ;;  %v456_v49 = vpop.permute.xlu1 %455 }
 0x26d   : > { %v462_v8 = vsel %vm461_vm7, %v456_v49, %v1701_v61  ;;  %vm924_vm7 = vcmask 785408   ;;  %v617_v61 = vld [vmem:[%s2286_s3] sm:$0xff] }
 0x26f   : > { %476 = vrot.lane.b32.xlu0 %v1839_v0, %s1847_s17 }
 0x270   : > { %562 = vrot.lane.b32.xlu1 %v1927_v19, %s1848_s18  ;;  %v1710_v50 = vpop.permute.xlu1 %1709 }
 0x271   : > { %v1712_v12 = vunpack.i.h.bf16 %v1710_v50  ;;  %v1711_v13 = vunpack.i.l.bf16 %v1710_v50 }
 0x273   : > { %1714 = vrot.lane.b32.xlu0 %v1698_v36, %s1849_s19  ;;  %v503_v22 = vsel %vm501_vm14, %v1711_v13, %v1712_v12 }
 0x274   : > { %604 = vrot.lane.b32.xlu1 %v1929_v20, %s1850_s20  ;;  %v496_v52 = vpop.permute.xlu1 %495 }
 0x275   : > { %v502_v27 = vsel %vm501_vm14, %v496_v52, %v1711_v13  ;;  %vm568_vm14 = vcmask 924672  }
 0x277   : > { %516 = vrot.lane.b32.xlu0 %v1839_v0, %s1849_s19 }
 0x278   : > { %1734 = vrot.lane.b32.xlu1 %v1733_v45, %s1851_s21  ;;  %v2006_v55 = vpop.permute.xlu1 %1719 }
 0x279   : > { %v1722_v14 = vunpack.i.h.bf16 %v2006_v55  ;;  %v1721_v15 = vunpack.i.l.bf16 %v2006_v55 }
 0x27b   : > { %1094 = vrot.lane.b32.xlu0 %v1978_v46, %s1846_s16  ;;  %v549_v24 = vsel %vm547_vm4, %v1721_v15, %v1722_v14 }
 0x27c   : > { %602 = vrot.lane.b32.xlu1 %v1927_v19, %s1850_s20  ;;  %v1605_v30 = vpack.c.bf16 %v549_v24, %v1929_v20 }
 0x27f   : > { %541 = vrot.lane.b32.xlu0 %v1927_v19, %s1841_s11 }
 0x280   : > { %811 = vrot.lane.b32.xlu1 %v1839_v0, %s1852_s22 }
 0x283   : > { %1729 = vrot.lane.b32.xlu0 %v1718_v37, %s1842_s12 }
 0x284   : > { %1749 = vrot.lane.b32.xlu1 %v1733_v45, %s1853_s23 }
 0x287   : > { %583 = vrot.lane.b32.xlu0 %v1927_v19, %s1842_s12  ;;  %s1862_s12 = smov 124  }
 0x288   : > { %851 = vrot.lane.b32.xlu1 %v1839_v0, %s1853_s23  ;;  %s2266_s23 = sshll.u32 %s2307_s25, 4 }
 0x289   : > { %s303_s10 = scalar_lea.vmem %s2290_s7, %s2266_s23 }
 0x28b   : > { %606 = vrot.lane.b32.xlu0 %v1839_v0, %s1850_s20 }
 0x28c   : > { %1187 = vrot.lane.b32.xlu1 %v1839_v0, %s1854_s26 }
 0x28f   : > { %1739 = vrot.lane.b32.xlu0 %v1733_v45, %s1852_s22 }
 0x290   : > { %1764 = vrot.lane.b32.xlu1 %v1763_v47, %s1846_s16 }
 0x293   : > { %790 = vrot.lane.b32.xlu0 %v1839_v0, %s1851_s21 }
 0x294   : > { %918 = vrot.lane.b32.xlu1 %v1946_v34, %s1846_s16 }
 0x297   : > { %1744 = vrot.lane.b32.xlu0 %v1733_v45, %s1855_s27 }
 0x29b   : > { %830 = vrot.lane.b32.xlu0 %v1839_v0, %s1855_s27 }
 0x29f   : > { %1166 = vrot.lane.b32.xlu0 %v1839_v0, %s1856_s28 }
 0x2a3   : > { %1754 = vrot.lane.b32.xlu0 %v1763_v47, %s1843_s13 }
 0x2a7   : > { %876 = vrot.lane.b32.xlu0 %v1946_v34, %s1843_s13 }
 0x2ab   : > { %1759 = vrot.lane.b32.xlu0 %v1763_v47, %s1857_s29 }
 0x2af   : > { %897 = vrot.lane.b32.xlu0 %v1946_v34, %s1857_s29 }
 0x2d9   : > { %v1099_v56 = vpop.permute.xlu0 %1098 }
 0x2da   : > { %v1097_v58 = vpop.permute.xlu1 %1096 }
 0x2db   : > { %v1101_v31 = vsel %vm924_vm7, %v1097_v58, %v1099_v56 }
 0x2dc   : > { %v2056_v37 = vmax.f32 %v1965_v43, %v1101_v31 }
 0x2dd   : > { %v1705_v62 = vpop.permute.xlu0 %1704 }
 0x2de   : > { %v1707_v63 = vunpack.i.h.bf16 %v1705_v62  ;;  %v1706_v1 = vunpack.i.l.bf16 %v1705_v62  ;;  %v2021_v5 = vpop.permute.xlu1 %1724  ;;  %v1798_v4 = vpack.i.bf16 %v1839_v0, %v2056_v37 }
 0x2df   : > { %v1727_v43 = vunpack.i.h.bf16 %v2021_v5  ;;  %v1726_v44 = vunpack.i.l.bf16 %v2021_v5 }
 0x2e0   : > { %v484_v3 = vsel %vm482_vm8, %v1706_v1, %v1707_v63 }
 0x2e1   : > { %v477_v6 = vpop.permute.xlu0 %476  ;;  %v1593_v7 = vpack.c.bf16 %v484_v3, %v463_v2 }
 0x2e2   : > { %v483_v9 = vsel %vm482_vm8, %v477_v6, %v1706_v1  ;;  %v563_v21 = vpop.permute.xlu1 %562  ;;  %vm1603_vm8 = vmpackc.low %vm437_vm10, %vm443_vm2 }
 0x2e3   : > { %v1596_v11 = vpack.c.bf16 %v483_v9, %v462_v8  ;;  %1595 = vmatprep.subr.msk.bf16.mxu1 %vm2017_vm12, %v1593_v7  ;;  %vm1609_vm10 = vmpackc.low %vm443_vm2, %vm1858_vm11  ;;  %v569_v53 = vsel %vm568_vm14, %v563_v21, %v1726_v44 }
 0x2e5   : > { %v1715_v16 = vpop.permute.xlu0 %1714  ;;  %1598 = vmatpush1.bf16.msk.msra.mxu1 %vm2026_vm13, %v1596_v11 }
 0x2e6   : > { %v1717_v17 = vunpack.i.h.bf16 %v1715_v16  ;;  %v1716_v18 = vunpack.i.l.bf16 %v1715_v16  ;;  %v605_v32 = vpop.permute.xlu1 %604 }
 0x2e8   : > { %v524_v23 = vsel %vm522_vm0, %v1716_v18, %v1717_v17 }
 0x2e9   : > { %v517_v25 = vpop.permute.xlu0 %516  ;;  %v1599_v26 = vpack.c.bf16 %v524_v23, %v503_v22 }
 0x2ea   : > { %v523_v28 = vsel %vm522_vm0, %v517_v25, %v1716_v18  ;;  %v2067_v41 = vpop.permute.xlu1 %1734  ;;  %vm773_vm0 = vcmp.ge.s32.totalorder %v2008_v57, 2 }
 0x2eb   : > { %v1602_v29 = vpack.c.bf16 %v523_v28, %v502_v27  ;;  %1601 = vmatprep.subr.msk.bf16.mxu1 %vm1600_vm3, %v1599_v26  ;;  %v1737_v62 = vunpack.i.h.bf16 %v2067_v41  ;;  %v1736_v63 = vunpack.i.l.bf16 %v2067_v41  ;;  %v636_v27 = vld [vmem:[%s2287_s4] sm:$0xff] }
 0x2ed   : > { %v1095_v33 = vpop.permute.xlu0 %1094  ;;  %1604 = vmatpush1.bf16.msk.msra.mxu1 %vm1603_vm8, %v1602_v29  ;;  %vm857_vm8 = vcmask 15360  }
 0x2ee   : > { %v1100_v36 = vsel %vm924_vm7, %v1095_v33, %v1097_v58  ;;  %1607 = vmatprep.subr.msk.bf16.mxu1 %vm1606_vm9, %v1605_v30  ;;  %v603_v50 = vpop.permute.xlu1 %602  ;;  %vm836_vm9 = vcmask 244736   ;;  %v1547_v33 = vld [vmem:[%s2287_s4 + $0x10] sm:$0xff] }
 0x2ef   : > { %v2059_v38 = vmax.f32 %v1978_v46, %v1100_v36  ;;  %v1778_v46 = vpack.i.bf16 %v2056_v37, %v1839_v0 }
 0x2f1   : > { %v542_v39 = vpop.permute.xlu0 %541  ;;  %v1773_v40 = vpack.i.bf16 %v2056_v37, %v2059_v38  ;;  %v1803_v3 = vpack.i.bf16 %v2059_v38, %v1839_v0 }
 0x2f2   : > { %v548_v20 = vsel %vm547_vm4, %v542_v39, %v1721_v15  ;;  %vm608_vm4 = vcmask 908288   ;;  %v812_v60 = vpop.permute.xlu1 %811 }
 0x2f3   : > { %v1608_v42 = vpack.c.bf16 %v548_v20, %v1927_v19  ;;  %1774 = vrot.lane.b32.xlu0 %v1773_v40, %s1859_s30  ;;  %1769 = vrot.lane.b32.xlu1 %v1773_v40, %s1860_s8  ;;  %v570_v19 = vsel %vm568_vm14, %v1726_v44, %v1727_v43  ;;  %v609_v1 = vsel %vm608_vm4, %v603_v50, %v605_v32  ;;  %vm778_vm14 = vcmp.lt.s32.totalorder %v2010_v59, 14 }
 0x2f5   : > { %v1730_v45 = vpop.permute.xlu0 %1729  ;;  %1610 = vmatpush1.bf16.msk.msra.mxu1 %vm1609_vm10, %v1608_v42  ;;  %vm779_vm10 = vcmp.lt.s32.totalorder %v2008_v57, 14 }
 0x2f6   : > { %v1732_v47 = vunpack.i.h.bf16 %v1730_v45  ;;  %v1731_v48 = vunpack.i.l.bf16 %v1730_v45  ;;  %v1750_v9 = vpop.permute.xlu1 %1749 }
 0x2f7   : > { %1779 = vrot.lane.b32.xlu0 %v1778_v46, %s1860_s8  ;;  %1784 = vrot.lane.b32.xlu1 %v1778_v46, %s1859_s30  ;;  %v1752_v17 = vunpack.i.h.bf16 %v1750_v9  ;;  %v1751_v18 = vunpack.i.l.bf16 %v1750_v9 }
 0x2f8   : > { %v591_v49 = vsel %vm589_vm5, %v1731_v48, %v1732_v47 }
 0x2f9   : > { %v1611_v51 = vpack.c.bf16 %v591_v49, %v570_v19  ;;  %v584_v52 = vpop.permute.xlu0 %583  ;;  %v859_v25 = vsel %vm857_vm8, %v1751_v18, %v1752_v17 }
 0x2fa   : > { %v590_v54 = vsel %vm589_vm5, %v584_v52, %v1731_v48  ;;  %vm642_vm5 = vcmask 588800   ;;  %v852_v24 = vpop.permute.xlu1 %851 }
 0x2fb   : > { %v1614_v55 = vpack.c.bf16 %v590_v54, %v569_v53  ;;  %1789 = vrot.lane.b32.xlu0 %v1773_v40, %s1856_s28  ;;  %941 = vrot.lane.b32.xlu1 %v1839_v0, %s1861_s9  ;;  %v858_v30 = vsel %vm857_vm8, %v852_v24, %v1751_v18  ;;  %vm1153_vm8 = vcmask 523264  }
 0x2fc   : > { %1613 = vmatprep.subr.msk.bf16.mxu1 %vm2017_vm12, %v1611_v51  ;;  %vm796_vm12 = vcmask 277504  }
 0x2fd   : > { %v607_v56 = vpop.permute.xlu0 %606  ;;  %1616 = vmatpush1.bf16.msk.msra.mxu1 %vm2026_vm13, %v1614_v55  ;;  %vm817_vm13 = vcmask 261120   ;;  %v798_v7 = vsel %vm796_vm12, %v1736_v63, %v1737_v62 }
 0x2fe   : > { %v610_v58 = vsel %vm608_vm4, %v605_v32, %v607_v56  ;;  %vm1624_vm4 = vmpackc.low %vm773_vm0, %vm779_vm10  ;;  %v2158_v39 = vpop.permute.xlu1 %1187 }
 0x2ff   : > { %939 = vrot.lane.b32.xlu0 %v1948_v35, %s1861_s9  ;;  %1794 = vrot.lane.b32.xlu1 %v1773_v40, %s1854_s26  ;;  %v1542_v40 = vld [vmem:[%s2287_s4 + $0x8] sm:$0xff] }
 0x300   : > { %1567 = vmatprep.subr.msk.mxu1 %vm444_vm15, %v610_v58  ;;  %vm772_vm15 = vcmp.ge.s32.totalorder %v2010_v59, 2 }
 0x301   : > { %v1740_v2 = vpop.permute.xlu0 %1739  ;;  %1568 = vmatpush1.msk.msra.mxu1 %vm443_vm2, %v609_v1  ;;  %vm2113_vm2 = vmpackc.low %vm1858_vm11, %vm773_vm0 }
 0x302   : > { %v1742_v5 = vunpack.i.h.bf16 %v1740_v2  ;;  %v1741_v6 = vunpack.i.l.bf16 %v1740_v2  ;;  %1538 = vmatmul.mubr.msk.f32.vlgmr.msra.gmra.mrb[0].mxu1 %vm642_vm5, %v617_v61  ;;  %vm2122_vm3 = vmpackc.low %vm1858_vm11, %vm772_vm15  ;;  %v1765_v43 = vpop.permute.xlu1 %1764 }
 0x303   : > { %1804 = vrot.lane.b32.xlu0 %v1803_v3, %s1860_s8  ;;  %1799 = vrot.lane.b32.xlu1 %v1798_v4, %s1862_s12  ;;  %vm1633_vm0 = vmpackc.low %vm778_vm14, %vm1858_vm11  ;;  %v1767_v48 = vunpack.i.h.bf16 %v1765_v43  ;;  %v1766_v19 = vunpack.i.l.bf16 %v1765_v43 }
 0x304   : > { %v819_v8 = vsel %vm817_vm13, %v1741_v6, %v1742_v5  ;;  %1378 = vmatprep.mubr.f32.mxu1 %v1839_v0  ;;  %v818_v14 = vsel %vm817_vm13, %v812_v60, %v1741_v6  ;;  %vm1630_vm13 = vmpackc.low %vm779_vm10, %vm1858_vm11 }
 0x305   : > { %v791_v10 = vpop.permute.xlu0 %790  ;;  %v1617_v11 = vpack.c.bf16 %v819_v8, %v798_v7 }
 0x306   : > { %v797_v13 = vsel %vm796_vm12, %v791_v10, %v1736_v63  ;;  %vm1627_vm12 = vmpackc.low %vm772_vm15, %vm778_vm14  ;;  %vm903_vm15 = vcmask 801792   ;;  %v919_v52 = vpop.permute.xlu1 %918 }
 0x307   : > { %v1620_v16 = vpack.c.bf16 %v818_v14, %v797_v13  ;;  %1272 = vrot.lane.b32.xlu0 %v2056_v37, %s1856_s28  ;;  %1211 = vrot.lane.b32.xlu1 %v2059_v38, %s1862_s12  ;;  %v925_v56 = vsel %vm924_vm7, %v919_v52, %v1766_v19 }
 0x308   : > { %1619 = vmatprep.subr.msk.bf16.mxu0 %vm2113_vm2, %v1617_v11 }
 0x309   : > { %v1745_v21 = vpop.permute.xlu0 %1744  ;;  %1622 = vmatpush1.bf16.msk.msra.mxu0 %vm2122_vm3, %v1620_v16 }
 0x30a   : > { %v1747_v22 = vunpack.i.h.bf16 %v1745_v21  ;;  %v1746_v23 = vunpack.i.l.bf16 %v1745_v21 }
 0x30b   : > { %937 = vrot.lane.b32.xlu0 %v1946_v34, %s1861_s9  ;;  %1809 = vrot.lane.b32.xlu1 %v1803_v3, %s1859_s30  ;;  %s298_s30 = scalar_lea.vmem %s2289_s6, %s2266_s23 }
 0x30c   : > { %v838_v26 = vsel %vm836_vm9, %v1746_v23, %v1747_v22 }
 0x30d   : > { %v831_v28 = vpop.permute.xlu0 %830  ;;  %v1623_v29 = vpack.c.bf16 %v859_v25, %v838_v26 }
 0x30e   : > { %v837_v31 = vsel %vm836_vm9, %v831_v28, %v1746_v23  ;;  %vm1109_vm9 = vcmp.ge.s32.totalorder %v2008_v57, 4 }
 0x30f   : > { %v1626_v32 = vpack.c.bf16 %v858_v30, %v837_v31  ;;  %639 = vperm.xlu0 %1697, %v636_v27   ;;  %1274 = vrot.lane.b32.xlu1 %v1839_v0, %s1856_s28 }
 0x310   : > { %1625 = vmatprep.subr.msk.bf16.mxu0 %vm1624_vm4, %v1623_v29  ;;  %vm943_vm4 = vcmask 769024  }
 0x311   : > { %v2156_v36 = vpop.permute.xlu0 %1166  ;;  %1628 = vmatpush1.bf16.msk.msra.mxu0 %vm1627_vm12, %v1626_v32  ;;  %vm2291_vm12 = vcmask 490496  }
 0x313   : > { %1308 = vperm.xlu0 %1697, %v1547_v33   ;;  %1270 = vrot.lane.b32.xlu1 %v2059_v38, %s1856_s28  ;;  %s293_s28 = scalar_lea.vmem %s2288_s5, %s2266_s23 }
 0x315   : > { %v1755_v20 = vpop.permute.xlu0 %1754 }
 0x316   : > { %v1757_v0 = vunpack.i.h.bf16 %v1755_v20  ;;  %v1756_v41 = vunpack.i.l.bf16 %v1755_v20 }
 0x317   : > { %976 = vperm.xlu1 %1813, %v1542_v40  }
 0x318   : > { %v884_v42 = vsel %vm882_vm6, %v1756_v41, %v1757_v0 }
 0x319   : > { %v1629_v44 = vpack.c.bf16 %v884_v42, %v1948_v35  ;;  %v877_v45 = vpop.permute.xlu0 %876  ;;  %v926_v35 = vsel %vm924_vm7, %v1766_v19, %v1767_v48  ;;  %vm2187_vm7 = vmpackc.low %vm1858_vm11, %vm1109_vm9 }
 0x31a   : > { %v883_v46 = vsel %vm882_vm6, %v877_v45, %v1756_v41  ;;  %vm1132_vm6 = vcmask 556032  }
 0x31b   : > { %v1632_v47 = vpack.c.bf16 %v883_v46, %v1946_v34  ;;  %1631 = vmatprep.subr.msk.bf16.mxu0 %vm1630_vm13, %v1629_v44  ;;  %vm1115_vm13 = vcmp.lt.s32.totalorder %v2008_v57, 12 }
 0x31d   : > { %v1760_v49 = vpop.permute.xlu0 %1759  ;;  %1634 = vmatpush1.bf16.msk.msra.mxu0 %vm1633_vm0, %v1632_v47  ;;  %vm1114_vm0 = vcmp.lt.s32.totalorder %v2010_v59, 12 }
 0x31e   : > { %v1762_v50 = vunpack.i.h.bf16 %v1760_v49  ;;  %v1761_v51 = vunpack.i.l.bf16 %v1760_v49 }
 0x320   : > { %v905_v53 = vsel %vm903_vm15, %v1761_v51, %v1762_v50 }
 0x321   : > { %v898_v54 = vpop.permute.xlu0 %897  ;;  %v1635_v55 = vpack.c.bf16 %v926_v35, %v905_v53 }
 0x322   : > { %v904_v58 = vsel %vm903_vm15, %v898_v54, %v1761_v51  ;;  %vm1648_vm15 = vmpackc.low %vm1109_vm9, %vm1115_vm13 }
 0x323   : > { %v1638_v60 = vpack.c.bf16 %v925_v56, %v904_v58  ;;  %1637 = vmatprep.subr.msk.bf16.mxu0 %vm2113_vm2, %v1635_v55  ;;  %vm1108_vm2 = vcmp.ge.s32.totalorder %v2010_v59, 4  ;;  %vm1657_vm9 = vmpackc.low %vm1114_vm0, %vm1858_vm11 }
 0x325   : > { %1640 = vmatpush1.bf16.msk.msra.mxu0 %vm2122_vm3, %v1638_v60  ;;  %vm2205_vm3 = vmpackc.low %vm1858_vm11, %vm1108_vm2 }
 0x365   : > { %v1770_v34 = vpop.permute.xlu1 %1769  ;;  %v1775_v61 = vpop.permute.xlu0 %1774 }
 0x366   : > { %v1772_v62 = vunpack.i.h.bf16 %v1770_v34  ;;  %v1771_v63 = vunpack.i.l.bf16 %v1770_v34  ;;  %v1777_v1 = vunpack.i.h.bf16 %v1775_v61  ;;  %v1776_v2 = vunpack.i.l.bf16 %v1775_v61  ;;  %v1546_v61 = vld [vmem:[%s2286_s3 + $0x10] sm:$0xff] }
 0x368   : > { %v1134_v3 = vsel %vm1132_vm6, %v1771_v63, %v1772_v62  ;;  %v1155_v4 = vsel %vm1153_vm8, %v1776_v2, %v1777_v1 }
 0x369   : > { %v1641_v6 = vpack.c.bf16 %v1155_v4, %v1134_v3  ;;  %v2191_v7 = vpop.permute.xlu1 %1784  ;;  %v2193_v8 = vpop.permute.xlu0 %1779 }
 0x36a   : > { %v1786_v9 = vunpack.i.l.bf16 %v2191_v7  ;;  %v1781_v10 = vunpack.i.l.bf16 %v2193_v8  ;;  %v1787_v46 = vunpack.i.h.bf16 %v2191_v7  ;;  %v1782_v19 = vunpack.i.h.bf16 %v2193_v8 }
 0x36b   : > { %1643 = vmatprep.subr.msk.bf16.mxu1 %vm2187_vm7, %v1641_v6 }
 0x36c   : > { %v1154_v11 = vsel %vm1153_vm8, %v1786_v9, %v1776_v2  ;;  %v1133_v12 = vsel %vm1132_vm6, %v1781_v10, %v1771_v63 }
 0x36d   : > { %v1644_v14 = vpack.c.bf16 %v1154_v11, %v1133_v12  ;;  %v942_v15 = vpop.permute.xlu1 %941  ;;  %v1790_v16 = vpop.permute.xlu0 %1789 }
 0x36e   : > { %v1792_v17 = vunpack.i.h.bf16 %v1790_v16  ;;  %v1791_v18 = vunpack.i.l.bf16 %v1790_v16 }
 0x36f   : > { %1646 = vmatpush1.bf16.msk.msra.mxu1 %vm2205_vm3, %v1644_v14 }
 0x370   : > { %v1173_v26 = vsel %vm2291_vm12, %v2156_v36, %v1791_v18  ;;  %v1174_v27 = vsel %vm2291_vm12, %v1791_v18, %v1792_v17  ;;  %vm1217_vm12 = vcmask 1014784  }
 0x371   : > { %v1795_v21 = vpop.permute.xlu1 %1794  ;;  %v940_v22 = vpop.permute.xlu0 %939 }
 0x372   : > { %v1797_v23 = vunpack.i.h.bf16 %v1795_v21  ;;  %v1796_v24 = vunpack.i.l.bf16 %v1795_v21  ;;  %v945_v25 = vsel %vm943_vm4, %v940_v22, %v942_v15 }
 0x373   : > { %1579 = vmatprep.subr.msk.mxu0 %vm779_vm10, %v945_v25  ;;  %vm1651_vm10 = vmpackc.low %vm1108_vm2, %vm1114_vm0 }
 0x374   : > { %v1193_v28 = vsel %vm343_vm1, %v2158_v39, %v1796_v24  ;;  %v1194_v29 = vsel %vm343_vm1, %v1796_v24, %v1797_v23  ;;  %vm1654_vm1 = vmpackc.low %vm1115_vm13, %vm1858_vm11  ;;  %vm2304_vm11 = vcmask 490496  }
 0x375   : > { %v1647_v30 = vpack.c.bf16 %v1194_v29, %v1174_v27  ;;  %v1650_v31 = vpack.c.bf16 %v1193_v28, %v1173_v26  ;;  %v1800_v32 = vpop.permute.xlu1 %1799  ;;  %v1805_v33 = vpop.permute.xlu0 %1804 }
 0x376   : > { %v1802_v36 = vunpack.i.h.bf16 %v1800_v32  ;;  %v1801_v40 = vunpack.i.l.bf16 %v1800_v32  ;;  %v1807_v44 = vunpack.i.h.bf16 %v1805_v33  ;;  %v1806_v45 = vunpack.i.l.bf16 %v1805_v33 }
 0x377   : > { %1649 = vmatprep.subr.msk.bf16.mxu1 %vm1648_vm15, %v1647_v30 }
 0x378   : > { %1652 = vmatpush1.bf16.msk.msra.mxu1 %vm1651_vm10, %v1650_v31  ;;  %v1219_v39 = vsel %vm1217_vm12, %v1801_v40, %v1802_v36  ;;  %v1239_v52 = vsel %vm1132_vm6, %v1782_v19, %v1806_v45 }
 0x379   : > { %v1212_v20 = vpop.permute.xlu1 %1211  ;;  %v1653_v0 = vpack.c.bf16 %v1219_v39, %v2056_v37  ;;  %v1273_v41 = vpop.permute.xlu0 %1272  ;;  %v1541_v37 = vld [vmem:[%s2286_s3 + $0x8] sm:$0xff] }
 0x37a   : > { %v1218_v42 = vsel %vm1217_vm12, %v1212_v20, %v1801_v40 }
 0x37b   : > { %v1656_v43 = vpack.c.bf16 %v1218_v42, %v2059_v38  ;;  %1655 = vmatprep.subr.msk.bf16.mxu1 %vm1654_vm1, %v1653_v0  ;;  %v1238_v38 = vsel %vm1132_vm6, %v1807_v44, %v1782_v19 }
 0x37d   : > { %v1810_v47 = vpop.permute.xlu1 %1809  ;;  %v938_v48 = vpop.permute.xlu0 %937  ;;  %1658 = vmatpush1.bf16.msk.msra.mxu1 %vm1657_vm9, %v1656_v43 }
 0x37e   : > { %v1812_v49 = vunpack.i.h.bf16 %v1810_v47  ;;  %v1811_v50 = vunpack.i.l.bf16 %v1810_v47  ;;  %v944_v51 = vsel %vm943_vm4, %v938_v48, %v940_v22 }
 0x37f   : > { %1580 = vmatpush1.msk.msra.mxu0 %vm778_vm14, %v944_v51  ;;  %vm2305_vm14 = vmmov %vm2304_vm11 }
 0x380   : > { %v1258_v35 = vsel %vm1153_vm8, %v1812_v49, %v1787_v46  ;;  %v1259_v53 = vsel %vm1153_vm8, %v1787_v46, %v1811_v50  ;;  %1543 = vmatmul.mubr.msk.f32.vlgmr.msra.gmra.mrb[2].mxu0 %vm642_vm5, %v1541_v37 }
 0x381   : > { %v1659_v54 = vpack.c.bf16 %v1259_v53, %v1239_v52  ;;  %v1662_v55 = vpack.c.bf16 %v1258_v35, %v1238_v38  ;;  %v1275_v56 = vpop.permute.xlu1 %1274 }
 0x382   : > { %v1277_v58 = vsel %vm2304_vm11, %v1273_v41, %v1275_v56 }
 0x383   : > { %1661 = vmatprep.subr.msk.bf16.mxu1 %vm2187_vm7, %v1659_v54 }
 0x384   : > { %1664 = vmatpush1.bf16.msk.msra.mxu1 %vm2205_vm3, %v1662_v55 }
 0x385   : > { %v1271_v60 = vpop.permute.xlu1 %1270  ;;  %1591 = vmatprep.subr.msk.mxu1 %vm1115_vm13, %v1277_v58 }
 0x386   : > { %v1276_v34 = vsel %vm2305_vm14, %v1271_v60, %v1273_v41 }
 0x388   : > { %1592 = vmatpush1.msk.msra.mxu1 %vm1114_vm0, %v1276_v34 }
 0x389   : > { %1548 = vmatmul.mubr.msk.f32.vlgmr.msra.gmra.mrb[2].mxu1 %vm642_vm5, %v1546_v61 }
 0x38e   : > { %v640_v62 = vpop.permute.xlu0 %639 }
 0x392   : > { %v1309_v23 = vpop.permute.xlu0 %1308 }
 0x396   : > { %v977_v12 = vpop.permute.xlu1 %976 }
 0x3d5   : > { %v712_v63 = vpop.f32.mrb[0].mxu1 }
 0x3d6   : > { %v713_v1 = vadd.f32 %v712_v63, %v640_v62  ;;  %v714_v2 = vpop.f32.mrb[1].mxu1 }
 0x3d7   : > { %v715_v3 = vadd.f32 %v714_v2, %v640_v62 }
 0x3d8   : > { %v719_v4 = vmin.f32 %v713_v1, 0.0  ;;  %vm717_vm5 = vcmp.gt.f32.partialorder %v713_v1, 0.0 }
 0x3d9   : > { %v720_v57 = vmin.f32 %v715_v3, 0.0  ;;  %vm718_vm6 = vcmp.gt.f32.partialorder %v715_v3, 0.0 }
 0x3da   : > { %v721_v5 = vmul.f32 1.442695, %v719_v4 }
 0x3db   : > { %v723_v6 = vmul.f32 1.442695, %v720_v57 }
 0x3dc   : > { %1819 = vpow2.f32 %v721_v5 }
 0x3dd   : > { %1821 = vpow2.f32 %v723_v6 }
 0x3e6   : > { %v1820_v7 = vpop.eup %1819 }
 0x3e7   : > { %v1822_v8 = vpop.eup %1821  ;;  %v1539_v59 = vadd.f32 -1.0, %v1820_v7 }
 0x3e8   : > { %v1540_v9 = vadd.f32 -1.0, %v1822_v8 }
 0x3e9   : > { %v727_v10 = vsel %vm717_vm5, %v713_v1, %v1539_v59 }
 0x3ea   : > { %729 = vst [vmem:[%s293_s28] sm:$0xff] %v727_v10  ;;  %v728_v11 = vsel %vm718_vm6, %v715_v3, %v1540_v9 }
 0x3eb   : > { %730 = vst [vmem:[%s293_s28 + $0x8] sm:$0xff] %v728_v11 }
 0x453   : > { %v1048_v13 = vpop.f32.mrb[2].mxu0 }
 0x454   : > { %v1049_v14 = vadd.f32 %v1048_v13, %v977_v12  ;;  %v1050_v15 = vpop.f32.mrb[3].mxu0 }
 0x455   : > { %v1051_v16 = vadd.f32 %v1050_v15, %v977_v12 }
 0x456   : > { %v1055_v17 = vmin.f32 %v1049_v14, 0.0  ;;  %vm1053_vm8 = vcmp.gt.f32.partialorder %v1049_v14, 0.0 }
 0x457   : > { %v1056_v18 = vmin.f32 %v1051_v16, 0.0  ;;  %vm1054_vm7 = vcmp.gt.f32.partialorder %v1051_v16, 0.0 }
 0x458   : > { %v1057_v21 = vmul.f32 1.442695, %v1055_v17 }
 0x459   : > { %v1059_v22 = vmul.f32 1.442695, %v1056_v18 }
 0x45a   : > { %1823 = vpow2.f32 %v1057_v21 }
 0x45b   : > { %1825 = vpow2.f32 %v1059_v22 }
 0x45c   : > { %v1380_v24 = vpop.f32.mrb[2].mxu1 }
 0x45d   : > { %v1381_v25 = vadd.f32 %v1380_v24, %v1309_v23  ;;  %v1382_v26 = vpop.f32.mrb[3].mxu1 }
 0x45e   : > { %v1383_v27 = vadd.f32 %v1382_v26, %v1309_v23 }
 0x45f   : > { %v1387_v28 = vmin.f32 %v1381_v25, 0.0  ;;  %vm1385_vm2 = vcmp.gt.f32.partialorder %v1381_v25, 0.0 }
 0x460   : > { %v1388_v29 = vmin.f32 %v1383_v27, 0.0  ;;  %vm1386_vm3 = vcmp.gt.f32.partialorder %v1383_v27, 0.0 }
 0x461   : > { %v1389_v30 = vmul.f32 1.442695, %v1387_v28 }
 0x462   : > { %v1391_v31 = vmul.f32 1.442695, %v1388_v29 }
 0x463   : > { %1827 = vpow2.f32 %v1389_v30 }
 0x464   : > { %v1824_v32 = vpop.eup %1823  ;;  %1829 = vpow2.f32 %v1391_v31 }
 0x465   : > { %v1826_v33 = vpop.eup %1825  ;;  %v1544_v36 = vadd.f32 -1.0, %v1824_v32 }
 0x466   : > { %v1545_v40 = vadd.f32 -1.0, %v1826_v33 }
 0x467   : > { %v1063_v39 = vsel %vm1053_vm8, %v1049_v14, %v1544_v36 }
 0x468   : > { %1065 = vst [vmem:[%s298_s30] sm:$0xff] %v1063_v39  ;;  %v1064_v20 = vsel %vm1054_vm7, %v1051_v16, %v1545_v40 }
 0x469   : > { %1066 = vst [vmem:[%s298_s30 + $0x8] sm:$0xff] %v1064_v20 }
 0x46d   : > { %v1828_v0 = vpop.eup %1827 }
 0x46e   : > { %v1830_v41 = vpop.eup %1829  ;;  %v1549_v42 = vadd.f32 -1.0, %v1828_v0 }
 0x46f   : > { %v1550_v43 = vadd.f32 -1.0, %v1830_v41 }
 0x470   : > { %v1395_v44 = vsel %vm1385_vm2, %v1381_v25, %v1549_v42 }
 0x471   : > { %1397 = vst [vmem:[%s303_s10] sm:$0xff] %v1395_v44  ;;  %v1396_v45 = vsel %vm1386_vm3, %v1383_v27, %v1550_v43 }
 0x472   : > { %1398 = vst [vmem:[%s303_s10 + $0x8] sm:$0xff] %v1396_v45 }
 0x473 PF: > { %s18_s24 = sadd.s32 1, %s1837_s24  }
 0x474   : > { %p15_p4 = scmp.ge.s32.totalorder %s18_s24, 4  }
 0x476   :  { %17 = sbr.rel (!%p15_p4) target bundleno = 1 (0x1), region = 98 }

</bundles_post_ra>
